<compile_context>
chip_gen: v6e
topology: v6e:2x2x1
jax: 0.10.0
libtpu: 0.0.40
codegen_flags: <defaults>
</compile_context>

<pallas_src>
import functools

import jax
import jax.numpy as jnp
from jax.experimental import pallas as pl
from jax.experimental.pallas import tpu as pltpu


def _focal_loss_kernel(anc_ref, reg_ref, cls_ref, ann_row_ref, ann_col_ref,
                       out_ref, *, alpha, gamma, sigma, iou_background,
                       iou_object, increase_foreground_by, num_real_anchors):
    """One (batch image, anchor tile) grid cell.

    Layouts (anchors on the 128-wide lane axis):
      anc_ref / reg_ref : (1, 4, TA)   rows = x1,y1,x2,y2 / dx,dy,dw,dh
      cls_ref           : (1, C, TA)
      ann_row_ref       : (1, 8, Mp)   rows 0..4 = x1,y1,x2,y2,label (rows 5..7 zero)
      ann_col_ref       : (1, Mp, 8)   same data, annotation-major (for IoU broadcasts)
      out_ref           : (1, 1, 128)  lanes 0..3 = [cls_sum, sel_count, reg_sum, obj_count]
    """
    a_idx = pl.program_id(1)

    anc = anc_ref[0].astype(jnp.float32)          # (4, TA)
    regs = reg_ref[0].astype(jnp.float32)         # (4, TA)
    probs = cls_ref[0].astype(jnp.float32)        # (C, TA)
    ann_row = ann_row_ref[0].astype(jnp.float32)  # (8, Mp)
    ann_col = ann_col_ref[0].astype(jnp.float32)  # (Mp, 8)

    C, TA = probs.shape
    Mp = ann_col.shape[0]

    # zero the per-image accumulator on the first anchor tile
    @pl.when(a_idx == 0)
    def _():
        out_ref[...] = jnp.zeros_like(out_ref)

    # ----- anchor coordinates: lane-dense (1, TA) rows -----
    ax1 = anc[0:1, :]
    ay1 = anc[1:2, :]
    ax2 = anc[2:3, :]
    ay2 = anc[3:4, :]

    # ----- annotation coordinates: (Mp, 1) columns -----
    gx1 = ann_col[:, 0:1]
    gy1 = ann_col[:, 1:2]
    gx2 = ann_col[:, 2:3]
    gy2 = ann_col[:, 3:4]
    glab = ann_col[:, 4:5]
    ann_valid = glab != -1.0                      # padded annotations have label == -1

    # wrapper-introduced padded anchors are masked out of every reduction
    lane = jax.lax.broadcasted_iota(jnp.int32, (1, TA), 1)
    anchor_valid = (a_idx * TA + lane) < num_real_anchors       # (1, TA)

    # ---------------- IoU: (Mp, TA) — annotations on sublanes, anchors on lanes ----------------
    iw = jnp.maximum(jnp.minimum(ax2, gx2) - jnp.maximum(ax1, gx1), 0.0)
    ih = jnp.maximum(jnp.minimum(ay2, gy2) - jnp.maximum(ay1, gy1), 0.0)
    inter = iw * ih
    area_a = (ax2 - ax1) * (ay2 - ay1)            # (1, TA)
    area_g = (gx2 - gx1) * (gy2 - gy1)            # (Mp, 1)
    iou = inter / jnp.maximum(area_a + area_g - inter, 1e-8)
    iou = jnp.where(ann_valid, iou, -1.0)         # invalid annotations never win

    iou_max = jnp.max(iou, axis=0, keepdims=True)                # (1, TA)

    # first-index argmax over annotations, one-hot just before the gather
    m_idx = jax.lax.broadcasted_iota(jnp.int32, (Mp, TA), 0)
    argmax = jnp.min(jnp.where(iou == iou_max, m_idx, Mp), axis=0, keepdims=True)
    onehot = (m_idx == argmax).astype(jnp.float32)               # (Mp, TA)

    # assigned-annotation gather as one MXU contraction: (8, Mp) @ (Mp, TA) -> (8, TA)
    assigned = jnp.dot(ann_row, onehot, preferred_element_type=jnp.float32)
    as_x1 = assigned[0:1, :]
    as_y1 = assigned[1:2, :]
    as_x2 = assigned[2:3, :]
    as_y2 = assigned[3:4, :]
    as_lab = assigned[4:5, :]

    obj_mask = jnp.logical_and(iou_max >= iou_object, anchor_valid)     # (1, TA)
    bg_mask = jnp.logical_and(iou_max < iou_background, anchor_valid)
    sel_mask = jnp.logical_or(obj_mask, bg_mask)

    # ---------------- focal classification loss (single log per element) ----------------
    cls_iota = jax.lax.broadcasted_iota(jnp.int32, (C, TA), 0)
    is_pos = jnp.logical_and(obj_mask, cls_iota == as_lab.astype(jnp.int32))   # (C, TA)

    p = jnp.clip(probs, 1e-5, 1.0 - 1e-5)
    p_t = jnp.where(is_pos, p, 1.0 - p)
    bce = jnp.where(sel_mask, -jnp.log(p_t), 0.0)   # ignored (and padded) anchors -> 0
    focal_base = 1.0 - p_t                          # == where(is_pos, 1 - p, p)
    alpha_t = jnp.where(is_pos, alpha, 1.0 - alpha)
    # specialize the power at trace time (gamma is a Python float)
    if gamma == 2.0:
        powed = focal_base * focal_base
    elif gamma == 1.0:
        powed = focal_base
    elif gamma == 0.0:
        powed = jnp.ones_like(focal_base)
    else:
        powed = jnp.exp(gamma * jnp.log(focal_base))
    loss = alpha_t * powed * bce
    if increase_foreground_by != 1.0:
        loss = jnp.where(obj_mask, loss * increase_foreground_by, loss)

    cls_sum = jnp.sum(loss)
    sel_count = jnp.sum(sel_mask.astype(jnp.float32))

    # TODO(synk): self.pos_loss / self.neg_loss side-effect attributes are not
    # materialized (forward() only returns the two loss means).

    # ---------------- smooth-L1 regression loss, per coordinate on (1, TA) slabs ----------------
    aw = ax2 - ax1
    ah = ay2 - ay1
    acx = ax1 + 0.5 * aw
    acy = ay1 + 0.5 * ah
    gw = jnp.maximum(as_x2 - as_x1, 1.0)
    gh = jnp.maximum(as_y2 - as_y1, 1.0)
    gcx = as_x1 + 0.5 * gw
    gcy = as_y1 + 0.5 * gh

    inv_sig2 = 1.0 / (sigma * sigma)

    def smooth_l1(target, pred):
        d = jnp.abs(target - pred)
        return jnp.where(d <= inv_sig2, 0.5 * (sigma * d) * (sigma * d), d - 0.5 * inv_sig2)

    reg_l = (smooth_l1((gcx - acx) / aw, regs[0:1, :])
             + smooth_l1((gcy - acy) / ah, regs[1:2, :])
             + smooth_l1(jnp.log(gw / aw), regs[2:3, :])
             + smooth_l1(jnp.log(gh / ah), regs[3:4, :]))        # (1, TA)
    reg_sum = jnp.sum(jnp.where(obj_mask, reg_l, 0.0))
    obj_count = jnp.sum(obj_mask.astype(jnp.float32))

    # ---------------- accumulate per-image stats into the resident output block ----------------
    out_lane = jax.lax.broadcasted_iota(jnp.int32, (1, 128), 1)
    tile_stats = (jnp.where(out_lane == 0, cls_sum, 0.0)
                  + jnp.where(out_lane == 1, sel_count, 0.0)
                  + jnp.where(out_lane == 2, reg_sum, 0.0)
                  + jnp.where(out_lane == 3, obj_count, 0.0))
    out_ref[0] = out_ref[0] + tile_stats


def focal_loss(anchors, regressions, classifications, annotations, *,
               alpha=0.25, gamma=2.0, sigma=3.0,
               iou_background=0.4, iou_object=0.5,
               increase_foreground_by=1.0, anchor_tile=512):
    """Returns (mean classification loss, mean regression loss) like FocalLoss.forward."""
    B, A, _ = anchors.shape
    C = classifications.shape[-1]
    M = annotations.shape[1]

    # ---- tile / pad sizes: anchor lane axis padded to a multiple of the 128-lane tile ----
    ta = max(128, (int(anchor_tile) // 128) * 128)
    ta = min(ta, pl.cdiv(A, 128) * 128)
    a_pad = pl.cdiv(A, ta) * ta
    m_pad = max(128, pl.cdiv(M, 128) * 128)
    n_a = a_pad // ta

    f32 = jnp.float32
    anchors = anchors.astype(f32)
    regressions = regressions.astype(f32)
    classifications = classifications.astype(f32)
    annotations = annotations.astype(f32)

    # ---- pad the anchor axis (padded anchors get a benign 1x1 box and are masked in-kernel) ----
    if a_pad != A:
        pad = a_pad - A
        pad_box = jnp.broadcast_to(jnp.array([0.0, 0.0, 1.0, 1.0], f32), (B, pad, 4))
        anchors = jnp.concatenate([anchors, pad_box], axis=1)
        regressions = jnp.concatenate([regressions, jnp.zeros((B, pad, 4), f32)], axis=1)
        classifications = jnp.concatenate(
            [classifications, jnp.full((B, pad, C), 0.5, f32)], axis=1)

    # ---- pad annotations to 128 lanes (padding convention: label == -1) ----
    if m_pad != M:
        annotations = jnp.concatenate(
            [annotations, -jnp.ones((B, m_pad - M, 5), f32)], axis=1)

    # ---- lane-dense layouts (anchor axis on lanes; annotations in both orientations) ----
    anchors_t = jnp.transpose(anchors, (0, 2, 1))                  # (B, 4, a_pad)
    regressions_t = jnp.transpose(regressions, (0, 2, 1))          # (B, 4, a_pad)
    classifications_t = jnp.transpose(classifications, (0, 2, 1))  # (B, C, a_pad)
    ann_col = jnp.concatenate(
        [annotations, jnp.zeros((B, m_pad, 3), f32)], axis=-1)     # (B, m_pad, 8)
    ann_row = jnp.transpose(ann_col, (0, 2, 1))                    # (B, 8, m_pad)

    kernel = functools.partial(
        _focal_loss_kernel,
        alpha=float(alpha), gamma=float(gamma), sigma=float(sigma),
        iou_background=float(iou_background), iou_object=float(iou_object),
        increase_foreground_by=float(increase_foreground_by),
        num_real_anchors=int(A))

    # advisory cost estimate for the XLA scheduler
    flops = int(B * a_pad * (14 * m_pad + 16 * m_pad + 12 * C + 40))
    transcendentals = int(B * a_pad * (C + 2))
    bytes_accessed = int(4 * (2 * B * a_pad * 4 + B * a_pad * C
                              + 2 * B * m_pad * 8 + B * 128))

    stats = pl.pallas_call(
        kernel,
        out_shape=jax.ShapeDtypeStruct((B, 1, 128), jnp.float32),
        grid=(B, n_a),
        in_specs=[
            pl.BlockSpec((1, 4, ta), lambda b, a: (b, 0, a)),
            pl.BlockSpec((1, 4, ta), lambda b, a: (b, 0, a)),
            pl.BlockSpec((1, C, ta), lambda b, a: (b, 0, a)),
            pl.BlockSpec((1, 8, m_pad), lambda b, a: (b, 0, 0)),
            pl.BlockSpec((1, m_pad, 8), lambda b, a: (b, 0, 0)),
        ],
        out_specs=pl.BlockSpec((1, 1, 128), lambda b, a: (b, 0, 0)),
        compiler_params=pltpu.CompilerParams(
            dimension_semantics=("parallel", "arbitrary"),
            vmem_limit_bytes=32 * 1024 * 1024),
        cost_estimate=pl.CostEstimate(
            flops=flops, transcendentals=transcendentals,
            bytes_accessed=bytes_accessed),
    )(anchors_t, regressions_t, classifications_t, ann_row, ann_col)

    cls_sum = stats[:, 0, 0]
    sel_count = stats[:, 0, 1]
    reg_sum = stats[:, 0, 2]
    obj_count = stats[:, 0, 3]

    # Per-image normalization + batch mean (matches the torch code). sel_count is clamped
    # so an image whose anchors all fall in the ignore band yields 0 (cls_sum is 0 there)
    # instead of the NaN the reference would produce.
    cls_loss = jnp.mean(cls_sum / jnp.maximum(sel_count, 1.0))
    reg_loss = jnp.mean(jnp.where(obj_count > 0.0,
                                  reg_sum / (jnp.maximum(obj_count, 1.0) * 4.0),
                                  0.0))
    # TODO(synk): soft=True variant (loss scaled by per-anchor IoU) not implemented.
    # TODO(synk): an image with zero valid annotations follows the all-background path;
    # the reference Anchors.assign source is unavailable to confirm a special case.
    return cls_loss, reg_loss


if __name__ == "__main__":
    key = jax.random.PRNGKey(0)
    B, A, C, M = 2, 300, 8, 8   # A=300 exercises anchor-axis padding + 3 anchor tiles
    k1, k2, k3, k4, k5, k6 = jax.random.split(key, 6)

    cx = jax.random.uniform(k1, (B, A), minval=10.0, maxval=90.0)
    cy = jax.random.uniform(k2, (B, A), minval=10.0, maxval=90.0)
    w = jax.random.uniform(k3, (B, A), minval=10.0, maxval=40.0)
    h = jax.random.uniform(k4, (B, A), minval=10.0, maxval=40.0)
    anchors = jnp.stack([cx - w / 2, cy - h / 2, cx + w / 2, cy + h / 2],
                        axis=-1).astype(jnp.float32)

    regressions = (0.1 * jax.random.normal(k5, (B, A, 4))).astype(jnp.float32)
    classifications = jax.nn.sigmoid(
        jax.random.normal(k6, (B, A, C))).astype(jnp.float32)

    # annotations: 2 valid objects per image (copied from anchors so IoU == 1),
    # remaining rows padded with -1 (the module's padding convention).
    annotations = -jnp.ones((B, M, 5), dtype=jnp.float32)
    annotations = annotations.at[:, 0, :4].set(anchors[:, 5, :])
    annotations = annotations.at[:, 0, 4].set(3.0)
    annotations = annotations.at[:, 1, :4].set(anchors[:, 257, :])
    annotations = annotations.at[:, 1, 4].set(1.0)

    cls_loss, reg_loss = focal_loss(anchors, regressions, classifications,
                                    annotations, anchor_tile=128)
    jax.block_until_ready((cls_loss, reg_loss))
    assert bool(jnp.isfinite(cls_loss)) and bool(jnp.isfinite(reg_loss))
    print("KERNEL_OK")
</pallas_src>

<mosaic_0001>
module attributes {stable_mosaic.version = 11 : i64} {
  func.func @_focal_loss_kernel(%arg0: i32, %arg1: i32, %arg2: memref<1x4x128xf32, #tpu.memory_space<vmem>>, %arg3: memref<1x4x128xf32, #tpu.memory_space<vmem>>, %arg4: memref<1x8x128xf32, #tpu.memory_space<vmem>>, %arg5: memref<1x8x128xf32, #tpu.memory_space<vmem>>, %arg6: memref<1x128x8xf32, #tpu.memory_space<vmem>>, %arg7: memref<1x1x128xf32, #tpu.memory_space<vmem>>) attributes {dimension_semantics = [#tpu.dimension_semantics<parallel>, #tpu.dimension_semantics<arbitrary>], iteration_bounds = array<i64: 2, 3>, scalar_prefetch = 0 : i64, scratch_operands = 0 : i64, tpu.core_type = #tpu.core_type<tc>, window_params = [{transform_indices = @transform_0, window_bounds = array<i64: 1, 4, 128>}, {transform_indices = @transform_1, window_bounds = array<i64: 1, 4, 128>}, {transform_indices = @transform_2, window_bounds = array<i64: 1, 8, 128>}, {transform_indices = @transform_3, window_bounds = array<i64: 1, 8, 128>}, {transform_indices = @transform_4, window_bounds = array<i64: 1, 128, 8>}, {transform_indices = @transform_5, window_bounds = array<i64: 1, 1, 128>}]} {
    %c0 = arith.constant 0 : index
    %c0_0 = arith.constant 0 : index
    %c0_1 = arith.constant 0 : index
    %0 = vector.load %arg2[%c0, %c0_0, %c0_1] : memref<1x4x128xf32, #tpu.memory_space<vmem>>, vector<1x4x128xf32>
    %1 = vector.shape_cast %0 : vector<1x4x128xf32> to vector<4x128xf32>
    %c0_2 = arith.constant 0 : index
    %c0_3 = arith.constant 0 : index
    %c0_4 = arith.constant 0 : index
    %2 = vector.load %arg3[%c0_2, %c0_3, %c0_4] : memref<1x4x128xf32, #tpu.memory_space<vmem>>, vector<1x4x128xf32>
    %3 = vector.shape_cast %2 : vector<1x4x128xf32> to vector<4x128xf32>
    %c0_5 = arith.constant 0 : index
    %c0_6 = arith.constant 0 : index
    %c0_7 = arith.constant 0 : index
    %4 = vector.load %arg4[%c0_5, %c0_6, %c0_7] : memref<1x8x128xf32, #tpu.memory_space<vmem>>, vector<1x8x128xf32>
    %5 = vector.shape_cast %4 : vector<1x8x128xf32> to vector<8x128xf32>
    %c0_8 = arith.constant 0 : index
    %c0_9 = arith.constant 0 : index
    %c0_10 = arith.constant 0 : index
    %6 = vector.load %arg5[%c0_8, %c0_9, %c0_10] : memref<1x8x128xf32, #tpu.memory_space<vmem>>, vector<1x8x128xf32>
    %7 = vector.shape_cast %6 : vector<1x8x128xf32> to vector<8x128xf32>
    %c0_11 = arith.constant 0 : index
    %c0_12 = arith.constant 0 : index
    %c0_13 = arith.constant 0 : index
    %8 = vector.load %arg6[%c0_11, %c0_12, %c0_13] : memref<1x128x8xf32, #tpu.memory_space<vmem>>, vector<1x128x8xf32>
    %9 = vector.shape_cast %8 : vector<1x128x8xf32> to vector<128x8xf32>
    %c0_i32 = arith.constant 0 : i32
    %10 = arith.cmpi eq, %arg1, %c0_i32 : i32
    %11 = arith.extui %10 : i1 to i32
    %c0_i32_14 = arith.constant 0 : i32
    %12 = arith.cmpi ne, %11, %c0_i32_14 : i32
    scf.if %12 {
      %cst_75 = arith.constant 0.000000e+00 : f32
      %263 = vector.broadcast %cst_75 : f32 to vector<1x1x128xf32>
      %c0_76 = arith.constant 0 : index
      %c0_77 = arith.constant 0 : index
      %c0_78 = arith.constant 0 : index
      %264 = vector.load %arg7[%c0_76, %c0_77, %c0_78] : memref<1x1x128xf32, #tpu.memory_space<vmem>>, vector<1x1x128xf32>
      tpu.vector_store %arg7[%c0_76, %c0_77, %c0_78], %263 {strides = array<i32>} : memref<1x1x128xf32, #tpu.memory_space<vmem>>, vector<1x1x128xf32>,
    } else {
    }
    %13 = vector.extract_strided_slice %1 {offsets = [0, 0], sizes = [1, 128], strides = [1, 1]} : vector<4x128xf32> to vector<1x128xf32>
    %14 = vector.extract_strided_slice %1 {offsets = [1, 0], sizes = [1, 128], strides = [1, 1]} : vector<4x128xf32> to vector<1x128xf32>
    %15 = vector.extract_strided_slice %1 {offsets = [2, 0], sizes = [1, 128], strides = [1, 1]} : vector<4x128xf32> to vector<1x128xf32>
    %16 = vector.extract_strided_slice %1 {offsets = [3, 0], sizes = [1, 128], strides = [1, 1]} : vector<4x128xf32> to vector<1x128xf32>
    %17 = vector.extract_strided_slice %9 {offsets = [0, 0], sizes = [128, 1], strides = [1, 1]} : vector<128x8xf32> to vector<128x1xf32>
    %18 = vector.extract_strided_slice %9 {offsets = [0, 1], sizes = [128, 1], strides = [1, 1]} : vector<128x8xf32> to vector<128x1xf32>
    %19 = vector.extract_strided_slice %9 {offsets = [0, 2], sizes = [128, 1], strides = [1, 1]} : vector<128x8xf32> to vector<128x1xf32>
    %20 = vector.extract_strided_slice %9 {offsets = [0, 3], sizes = [128, 1], strides = [1, 1]} : vector<128x8xf32> to vector<128x1xf32>
    %21 = vector.extract_strided_slice %9 {offsets = [0, 4], sizes = [128, 1], strides = [1, 1]} : vector<128x8xf32> to vector<128x1xf32>
    %cst = arith.constant -1.000000e+00 : f32
    %22 = vector.broadcast %cst : f32 to vector<128x1xf32>
    %23 = arith.cmpf one, %21, %22 : vector<128x1xf32>
    %24 = tpu.iota {dimensions = array<i32: 1>} : vector<1x128xi32>
    %c128_i32 = arith.constant 128 : i32
    %25 = arith.muli %arg1, %c128_i32 : i32
    %26 = vector.broadcast %25 : i32 to vector<1x128xi32>
    %27 = arith.addi %26, %24 : vector<1x128xi32>
    %c300_i32 = arith.constant 300 : i32
    %28 = vector.broadcast %c300_i32 : i32 to vector<1x128xi32>
    %29 = arith.cmpi slt, %27, %28 : vector<1x128xi32>
    %30 = vector.broadcast %15 : vector<1x128xf32> to vector<128x128xf32>
    %31 = vector.broadcast %19 : vector<128x1xf32> to vector<128x128xf32>
    %32 = arith.minimumf %30, %31 : vector<128x128xf32>
    %33 = vector.broadcast %13 : vector<1x128xf32> to vector<128x128xf32>
    %34 = vector.broadcast %17 : vector<128x1xf32> to vector<128x128xf32>
    %35 = arith.maximumf %33, %34 : vector<128x128xf32>
    %36 = arith.subf %32, %35 : vector<128x128xf32>
    %cst_15 = arith.constant 0.000000e+00 : f32
    %37 = vector.broadcast %cst_15 : f32 to vector<128x128xf32>
    %38 = arith.maximumf %36, %37 : vector<128x128xf32>
    %39 = vector.broadcast %16 : vector<1x128xf32> to vector<128x128xf32>
    %40 = vector.broadcast %20 : vector<128x1xf32> to vector<128x128xf32>
    %41 = arith.minimumf %39, %40 : vector<128x128xf32>
    %42 = vector.broadcast %14 : vector<1x128xf32> to vector<128x128xf32>
    %43 = vector.broadcast %18 : vector<128x1xf32> to vector<128x128xf32>
    %44 = arith.maximumf %42, %43 : vector<128x128xf32>
    %45 = arith.subf %41, %44 : vector<128x128xf32>
    %cst_16 = arith.constant 0.000000e+00 : f32
    %46 = vector.broadcast %cst_16 : f32 to vector<128x128xf32>
    %47 = arith.maximumf %45, %46 : vector<128x128xf32>
    %48 = arith.mulf %38, %47 : vector<128x128xf32>
    %49 = arith.subf %15, %13 : vector<1x128xf32>
    %50 = arith.subf %16, %14 : vector<1x128xf32>
    %51 = arith.mulf %49, %50 : vector<1x128xf32>
    %52 = arith.subf %19, %17 : vector<128x1xf32>
    %53 = arith.subf %20, %18 : vector<128x1xf32>
    %54 = arith.mulf %52, %53 : vector<128x1xf32>
    %55 = vector.broadcast %51 : vector<1x128xf32> to vector<128x128xf32>
    %56 = vector.broadcast %54 : vector<128x1xf32> to vector<128x128xf32>
    %57 = arith.addf %55, %56 : vector<128x128xf32>
    %58 = arith.subf %57, %48 : vector<128x128xf32>
    %cst_17 = arith.constant 9.99999993E-9 : f32
    %59 = vector.broadcast %cst_17 : f32 to vector<128x128xf32>
    %60 = arith.maximumf %58, %59 : vector<128x128xf32>
    %61 = arith.divf %48, %60 : vector<128x128xf32>
    %cst_18 = arith.constant -1.000000e+00 : f32
    %62 = vector.shape_cast %23 : vector<128x1xi1> to vector<128x1xi1>
    %63 = vector.broadcast %62 : vector<128x1xi1> to vector<128x128xi1>
    %64 = vector.broadcast %cst_18 : f32 to vector<128x128xf32>
    %65 = arith.select %63, %61, %64 : vector<128x128xi1>, vector<128x128xf32>
    %cst_19 = arith.constant dense<0xFF800000> : vector<128xf32>
    %66 = vector.multi_reduction <maximumf>, %65, %cst_19 [0] : vector<128x128xf32> to vector<128xf32>
    %67 = vector.shape_cast %66 : vector<128xf32> to vector<1x128xf32>
    %68 = tpu.iota {dimensions = array<i32: 0>} : vector<128x128xi32>
    %69 = vector.broadcast %67 : vector<1x128xf32> to vector<128x128xf32>
    %70 = arith.cmpf oeq, %65, %69 : vector<128x128xf32>
    %c128_i32_20 = arith.constant 128 : i32
    %71 = vector.broadcast %c128_i32_20 : i32 to vector<128x128xi32>
    %72 = arith.select %70, %68, %71 : vector<128x128xi1>, vector<128x128xi32>
    %cst_21 = arith.constant dense<2147483647> : vector<128xi32>
    %73 = vector.multi_reduction <minsi>, %72, %cst_21 [0] : vector<128x128xi32> to vector<128xi32>
    %74 = vector.shape_cast %73 : vector<128xi32> to vector<1x128xi32>
    %75 = vector.broadcast %74 : vector<1x128xi32> to vector<128x128xi32>
    %76 = arith.cmpi eq, %68, %75 : vector<128x128xi32>
    %77 = arith.extui %76 : vector<128x128xi1> to vector<128x128xi32>
    %78 = arith.sitofp %77 : vector<128x128xi32> to vector<128x128xf32>
    %cst_22 = arith.constant dense<0.000000e+00> : vector<8x128xf32>
    %79 = tpu.matmul %7, %78, %cst_22 {dimension_numbers = #tpu.dot_dimension_numbers<[1], [0], [0], [1], [0, 0, 1, 1], [], []>} : vector<8x128xf32>, vector<128x128xf32>, vector<8x128xf32> -> vector<8x128xf32>
    %80 = vector.extract_strided_slice %79 {offsets = [0, 0], sizes = [1, 128], strides = [1, 1]} : vector<8x128xf32> to vector<1x128xf32>
    %81 = vector.extract_strided_slice %79 {offsets = [1, 0], sizes = [1, 128], strides = [1, 1]} : vector<8x128xf32> to vector<1x128xf32>
    %82 = vector.extract_strided_slice %79 {offsets = [2, 0], sizes = [1, 128], strides = [1, 1]} : vector<8x128xf32> to vector<1x128xf32>
    %83 = vector.extract_strided_slice %79 {offsets = [3, 0], sizes = [1, 128], strides = [1, 1]} : vector<8x128xf32> to vector<1x128xf32>
    %84 = vector.extract_strided_slice %79 {offsets = [4, 0], sizes = [1, 128], strides = [1, 1]} : vector<8x128xf32> to vector<1x128xf32>
    %cst_23 = arith.constant 5.000000e-01 : f32
    %85 = vector.broadcast %cst_23 : f32 to vector<1x128xf32>
    %86 = arith.cmpf oge, %67, %85 : vector<1x128xf32>
    %87 = arith.andi %86, %29 : vector<1x128xi1>
    %cst_24 = arith.constant 4.000000e-01 : f32
    %88 = vector.broadcast %cst_24 : f32 to vector<1x128xf32>
    %89 = arith.cmpf olt, %67, %88 : vector<1x128xf32>
    %90 = arith.andi %89, %29 : vector<1x128xi1>
    %91 = arith.ori %87, %90 : vector<1x128xi1>
    %92 = tpu.iota {dimensions = array<i32: 0>} : vector<8x128xi32>
    %93 = arith.fptosi %84 : vector<1x128xf32> to vector<1x128xi32>
    %94 = vector.broadcast %93 : vector<1x128xi32> to vector<8x128xi32>
    %95 = arith.cmpi eq, %92, %94 : vector<8x128xi32>
    %96 = vector.broadcast %87 : vector<1x128xi1> to vector<8x128xi1>
    %97 = arith.andi %96, %95 : vector<8x128xi1>
    %cst_25 = arith.constant 9.99999974E-6 : f32
    %cst_26 = arith.constant 0.999989986 : f32
    %98 = vector.broadcast %cst_25 : f32 to vector<8x128xf32>
    %99 = arith.maximumf %98, %5 : vector<8x128xf32>
    %100 = vector.broadcast %cst_26 : f32 to vector<8x128xf32>
    %101 = arith.minimumf %100, %99 : vector<8x128xf32>
    %cst_27 = arith.constant 1.000000e+00 : f32
    %102 = vector.broadcast %cst_27 : f32 to vector<8x128xf32>
    %103 = arith.subf %102, %101 : vector<8x128xf32>
    %104 = arith.select %97, %101, %103 : vector<8x128xi1>, vector<8x128xf32>
    %105 = math.log %104 : vector<8x128xf32>
    %cst_28 = arith.constant 0.000000e+00 : f32
    %106 = vector.broadcast %cst_28 : f32 to vector<8x128xf32>
    %107 = arith.subf %106, %105 : vector<8x128xf32>
    %cst_29 = arith.constant 0.000000e+00 : f32
    %108 = vector.shape_cast %91 : vector<1x128xi1> to vector<1x128xi1>
    %109 = vector.broadcast %108 : vector<1x128xi1> to vector<8x128xi1>
    %110 = vector.broadcast %cst_29 : f32 to vector<8x128xf32>
    %111 = arith.select %109, %107, %110 : vector<8x128xi1>, vector<8x128xf32>
    %cst_30 = arith.constant 1.000000e+00 : f32
    %112 = vector.broadcast %cst_30 : f32 to vector<8x128xf32>
    %113 = arith.subf %112, %104 : vector<8x128xf32>
    %cst_31 = arith.constant 2.500000e-01 : f32
    %cst_32 = arith.constant 7.500000e-01 : f32
    %114 = vector.broadcast %cst_31 : f32 to vector<8x128xf32>
    %115 = vector.broadcast %cst_32 : f32 to vector<8x128xf32>
    %116 = arith.select %97, %114, %115 : vector<8x128xi1>, vector<8x128xf32>
    %117 = arith.mulf %113, %113 : vector<8x128xf32>
    %118 = arith.mulf %116, %117 : vector<8x128xf32>
    %119 = arith.mulf %118, %111 : vector<8x128xf32>
    %120 = vector.shape_cast %119 : vector<8x128xf32> to vector<1x8x128xf32>
    %cst_33 = arith.constant dense<0.000000e+00> : vector<1xf32>
    %121 = vector.multi_reduction <add>, %120, %cst_33 [1, 2] : vector<1x8x128xf32> to vector<1xf32>
    %122 = vector.shape_cast %121 : vector<1xf32> to vector<1x1x1xf32>
    %123 = vector.extract %122[0, 0, 0] : f32 from vector<1x1x1xf32>
    %124 = arith.extui %91 : vector<1x128xi1> to vector<1x128xi32>
    %125 = arith.sitofp %124 : vector<1x128xi32> to vector<1x128xf32>
    %126 = vector.shape_cast %125 : vector<1x128xf32> to vector<1x1x128xf32>
    %cst_34 = arith.constant dense<0.000000e+00> : vector<1xf32>
    %127 = vector.multi_reduction <add>, %126, %cst_34 [1, 2] : vector<1x1x128xf32> to vector<1xf32>
    %128 = vector.shape_cast %127 : vector<1xf32> to vector<1x1x1xf32>
    %129 = vector.extract %128[0, 0, 0] : f32 from vector<1x1x1xf32>
    %130 = arith.subf %15, %13 : vector<1x128xf32>
    %131 = arith.subf %16, %14 : vector<1x128xf32>
    %cst_35 = arith.constant 5.000000e-01 : f32
    %132 = vector.broadcast %cst_35 : f32 to vector<1x128xf32>
    %133 = arith.mulf %132, %130 : vector<1x128xf32>
    %134 = arith.addf %13, %133 : vector<1x128xf32>
    %cst_36 = arith.constant 5.000000e-01 : f32
    %135 = vector.broadcast %cst_36 : f32 to vector<1x128xf32>
    %136 = arith.mulf %135, %131 : vector<1x128xf32>
    %137 = arith.addf %14, %136 : vector<1x128xf32>
    %138 = arith.subf %82, %80 : vector<1x128xf32>
    %cst_37 = arith.constant 1.000000e+00 : f32
    %139 = vector.broadcast %cst_37 : f32 to vector<1x128xf32>
    %140 = arith.maximumf %138, %139 : vector<1x128xf32>
    %141 = arith.subf %83, %81 : vector<1x128xf32>
    %cst_38 = arith.constant 1.000000e+00 : f32
    %142 = vector.broadcast %cst_38 : f32 to vector<1x128xf32>
    %143 = arith.maximumf %141, %142 : vector<1x128xf32>
    %cst_39 = arith.constant 5.000000e-01 : f32
    %144 = vector.broadcast %cst_39 : f32 to vector<1x128xf32>
    %145 = arith.mulf %144, %140 : vector<1x128xf32>
    %146 = arith.addf %80, %145 : vector<1x128xf32>
    %cst_40 = arith.constant 5.000000e-01 : f32
    %147 = vector.broadcast %cst_40 : f32 to vector<1x128xf32>
    %148 = arith.mulf %147, %143 : vector<1x128xf32>
    %149 = arith.addf %81, %148 : vector<1x128xf32>
    %150 = arith.subf %146, %134 : vector<1x128xf32>
    %151 = arith.divf %150, %130 : vector<1x128xf32>
    %152 = vector.extract_strided_slice %3 {offsets = [0, 0], sizes = [1, 128], strides = [1, 1]} : vector<4x128xf32> to vector<1x128xf32>
    %153 = arith.subf %151, %152 : vector<1x128xf32>
    %154 = math.absf %153 : vector<1x128xf32>
    %cst_41 = arith.constant 0.111111112 : f32
    %155 = vector.broadcast %cst_41 : f32 to vector<1x128xf32>
    %156 = arith.cmpf ole, %154, %155 : vector<1x128xf32>
    %cst_42 = arith.constant 3.000000e+00 : f32
    %157 = vector.broadcast %cst_42 : f32 to vector<1x128xf32>
    %158 = arith.mulf %157, %154 : vector<1x128xf32>
    %cst_43 = arith.constant 5.000000e-01 : f32
    %159 = vector.broadcast %cst_43 : f32 to vector<1x128xf32>
    %160 = arith.mulf %159, %158 : vector<1x128xf32>
    %cst_44 = arith.constant 3.000000e+00 : f32
    %161 = vector.broadcast %cst_44 : f32 to vector<1x128xf32>
    %162 = arith.mulf %161, %154 : vector<1x128xf32>
    %163 = arith.mulf %160, %162 : vector<1x128xf32>
    %cst_45 = arith.constant 0.055555556 : f32
    %164 = vector.broadcast %cst_45 : f32 to vector<1x128xf32>
    %165 = arith.subf %154, %164 : vector<1x128xf32>
    %166 = arith.select %156, %163, %165 : vector<1x128xi1>, vector<1x128xf32>
    %167 = arith.subf %149, %137 : vector<1x128xf32>
    %168 = arith.divf %167, %131 : vector<1x128xf32>
    %169 = vector.extract_strided_slice %3 {offsets = [1, 0], sizes = [1, 128], strides = [1, 1]} : vector<4x128xf32> to vector<1x128xf32>
    %170 = arith.subf %168, %169 : vector<1x128xf32>
    %171 = math.absf %170 : vector<1x128xf32>
    %cst_46 = arith.constant 0.111111112 : f32
    %172 = vector.broadcast %cst_46 : f32 to vector<1x128xf32>
    %173 = arith.cmpf ole, %171, %172 : vector<1x128xf32>
    %cst_47 = arith.constant 3.000000e+00 : f32
    %174 = vector.broadcast %cst_47 : f32 to vector<1x128xf32>
    %175 = arith.mulf %174, %171 : vector<1x128xf32>
    %cst_48 = arith.constant 5.000000e-01 : f32
    %176 = vector.broadcast %cst_48 : f32 to vector<1x128xf32>
    %177 = arith.mulf %176, %175 : vector<1x128xf32>
    %cst_49 = arith.constant 3.000000e+00 : f32
    %178 = vector.broadcast %cst_49 : f32 to vector<1x128xf32>
    %179 = arith.mulf %178, %171 : vector<1x128xf32>
    %180 = arith.mulf %177, %179 : vector<1x128xf32>
    %cst_50 = arith.constant 0.055555556 : f32
    %181 = vector.broadcast %cst_50 : f32 to vector<1x128xf32>
    %182 = arith.subf %171, %181 : vector<1x128xf32>
    %183 = arith.select %173, %180, %182 : vector<1x128xi1>, vector<1x128xf32>
    %184 = arith.addf %166, %183 : vector<1x128xf32>
    %185 = arith.divf %140, %130 : vector<1x128xf32>
    %186 = math.log %185 : vector<1x128xf32>
    %187 = vector.extract_strided_slice %3 {offsets = [2, 0], sizes = [1, 128], strides = [1, 1]} : vector<4x128xf32> to vector<1x128xf32>
    %188 = arith.subf %186, %187 : vector<1x128xf32>
    %189 = math.absf %188 : vector<1x128xf32>
    %cst_51 = arith.constant 0.111111112 : f32
    %190 = vector.broadcast %cst_51 : f32 to vector<1x128xf32>
    %191 = arith.cmpf ole, %189, %190 : vector<1x128xf32>
    %cst_52 = arith.constant 3.000000e+00 : f32
    %192 = vector.broadcast %cst_52 : f32 to vector<1x128xf32>
    %193 = arith.mulf %192, %189 : vector<1x128xf32>
    %cst_53 = arith.constant 5.000000e-01 : f32
    %194 = vector.broadcast %cst_53 : f32 to vector<1x128xf32>
    %195 = arith.mulf %194, %193 : vector<1x128xf32>
    %cst_54 = arith.constant 3.000000e+00 : f32
    %196 = vector.broadcast %cst_54 : f32 to vector<1x128xf32>
    %197 = arith.mulf %196, %189 : vector<1x128xf32>
    %198 = arith.mulf %195, %197 : vector<1x128xf32>
    %cst_55 = arith.constant 0.055555556 : f32
    %199 = vector.broadcast %cst_55 : f32 to vector<1x128xf32>
    %200 = arith.subf %189, %199 : vector<1x128xf32>
    %201 = arith.select %191, %198, %200 : vector<1x128xi1>, vector<1x128xf32>
    %202 = arith.addf %184, %201 : vector<1x128xf32>
    %203 = arith.divf %143, %131 : vector<1x128xf32>
    %204 = math.log %203 : vector<1x128xf32>
    %205 = vector.extract_strided_slice %3 {offsets = [3, 0], sizes = [1, 128], strides = [1, 1]} : vector<4x128xf32> to vector<1x128xf32>
    %206 = arith.subf %204, %205 : vector<1x128xf32>
    %207 = math.absf %206 : vector<1x128xf32>
    %cst_56 = arith.constant 0.111111112 : f32
    %208 = vector.broadcast %cst_56 : f32 to vector<1x128xf32>
    %209 = arith.cmpf ole, %207, %208 : vector<1x128xf32>
    %cst_57 = arith.constant 3.000000e+00 : f32
    %210 = vector.broadcast %cst_57 : f32 to vector<1x128xf32>
    %211 = arith.mulf %210, %207 : vector<1x128xf32>
    %cst_58 = arith.constant 5.000000e-01 : f32
    %212 = vector.broadcast %cst_58 : f32 to vector<1x128xf32>
    %213 = arith.mulf %212, %211 : vector<1x128xf32>
    %cst_59 = arith.constant 3.000000e+00 : f32
    %214 = vector.broadcast %cst_59 : f32 to vector<1x128xf32>
    %215 = arith.mulf %214, %207 : vector<1x128xf32>
    %216 = arith.mulf %213, %215 : vector<1x128xf32>
    %cst_60 = arith.constant 0.055555556 : f32
    %217 = vector.broadcast %cst_60 : f32 to vector<1x128xf32>
    %218 = arith.subf %207, %217 : vector<1x128xf32>
    %219 = arith.select %209, %216, %218 : vector<1x128xi1>, vector<1x128xf32>
    %220 = arith.addf %202, %219 : vector<1x128xf32>
    %cst_61 = arith.constant 0.000000e+00 : f32
    %221 = vector.broadcast %cst_61 : f32 to vector<1x128xf32>
    %222 = arith.select %87, %220, %221 : vector<1x128xi1>, vector<1x128xf32>
    %223 = vector.shape_cast %222 : vector<1x128xf32> to vector<1x1x128xf32>
    %cst_62 = arith.constant dense<0.000000e+00> : vector<1xf32>
    %224 = vector.multi_reduction <add>, %223, %cst_62 [1, 2] : vector<1x1x128xf32> to vector<1xf32>
    %225 = vector.shape_cast %224 : vector<1xf32> to vector<1x1x1xf32>
    %226 = vector.extract %225[0, 0, 0] : f32 from vector<1x1x1xf32>
    %227 = arith.extui %87 : vector<1x128xi1> to vector<1x128xi32>
    %228 = arith.sitofp %227 : vector<1x128xi32> to vector<1x128xf32>
    %229 = vector.shape_cast %228 : vector<1x128xf32> to vector<1x1x128xf32>
    %cst_63 = arith.constant dense<0.000000e+00> : vector<1xf32>
    %230 = vector.multi_reduction <add>, %229, %cst_63 [1, 2] : vector<1x1x128xf32> to vector<1xf32>
    %231 = vector.shape_cast %230 : vector<1xf32> to vector<1x1x1xf32>
    %232 = vector.extract %231[0, 0, 0] : f32 from vector<1x1x1xf32>
    %233 = tpu.iota {dimensions = array<i32: 1>} : vector<1x128xi32>
    %c0_i32_64 = arith.constant 0 : i32
    %234 = vector.broadcast %c0_i32_64 : i32 to vector<1x128xi32>
    %235 = arith.cmpi eq, %233, %234 : vector<1x128xi32>
    %cst_65 = arith.constant 0.000000e+00 : f32
    %236 = vector.broadcast %123 : f32 to vector<1x128xf32>
    %237 = vector.broadcast %cst_65 : f32 to vector<1x128xf32>
    %238 = arith.select %235, %236, %237 : vector<1x128xi1>, vector<1x128xf32>
    %c1_i32 = arith.constant 1 : i32
    %239 = vector.broadcast %c1_i32 : i32 to vector<1x128xi32>
    %240 = arith.cmpi eq, %233, %239 : vector<1x128xi32>
    %cst_66 = arith.constant 0.000000e+00 : f32
    %241 = vector.broadcast %129 : f32 to vector<1x128xf32>
    %242 = vector.broadcast %cst_66 : f32 to vector<1x128xf32>
    %243 = arith.select %240, %241, %242 : vector<1x128xi1>, vector<1x128xf32>
    %244 = arith.addf %238, %243 : vector<1x128xf32>
    %c2_i32 = arith.constant 2 : i32
    %245 = vector.broadcast %c2_i32 : i32 to vector<1x128xi32>
    %246 = arith.cmpi eq, %233, %245 : vector<1x128xi32>
    %cst_67 = arith.constant 0.000000e+00 : f32
    %247 = vector.broadcast %226 : f32 to vector<1x128xf32>
    %248 = vector.broadcast %cst_67 : f32 to vector<1x128xf32>
    %249 = arith.select %246, %247, %248 : vector<1x128xi1>, vector<1x128xf32>
    %250 = arith.addf %244, %249 : vector<1x128xf32>
    %c3_i32 = arith.constant 3 : i32
    %251 = vector.broadcast %c3_i32 : i32 to vector<1x128xi32>
    %252 = arith.cmpi eq, %233, %251 : vector<1x128xi32>
    %cst_68 = arith.constant 0.000000e+00 : f32
    %253 = vector.broadcast %232 : f32 to vector<1x128xf32>
    %254 = vector.broadcast %cst_68 : f32 to vector<1x128xf32>
    %255 = arith.select %252, %253, %254 : vector<1x128xi1>, vector<1x128xf32>
    %256 = arith.addf %250, %255 : vector<1x128xf32>
    %c0_69 = arith.constant 0 : index
    %c0_70 = arith.constant 0 : index
    %c0_71 = arith.constant 0 : index
    %257 = vector.load %arg7[%c0_69, %c0_70, %c0_71] : memref<1x1x128xf32, #tpu.memory_space<vmem>>, vector<1x1x128xf32>
    %258 = vector.shape_cast %257 : vector<1x1x128xf32> to vector<1x128xf32>
    %259 = arith.addf %258, %256 : vector<1x128xf32>
    %c0_72 = arith.constant 0 : index
    %c0_73 = arith.constant 0 : index
    %c0_74 = arith.constant 0 : index
    %260 = vector.load %arg7[%c0_72, %c0_73, %c0_74] : memref<1x1x128xf32, #tpu.memory_space<vmem>>, vector<1x1x128xf32>
    %261 = vector.shape_cast %260 : vector<1x1x128xf32> to vector<1x128xf32>
    %262 = vector.shape_cast %259 : vector<1x128xf32> to vector<1x1x128xf32>
    tpu.vector_store %arg7[%c0_72, %c0_73, %c0_74], %262 {strides = array<i32>} : memref<1x1x128xf32, #tpu.memory_space<vmem>>, vector<1x1x128xf32>,
    return
  }
  func.func @transform_0(%arg0: i32, %arg1: i32) -> (i32, i32, i32) {
    %c0_i32 = arith.constant 0 : i32
    %c0_i32_0 = arith.constant 0 : i32
    return %arg0, %c0_i32, %arg1 : i32, i32, i32
  }
  func.func @transform_1(%arg0: i32, %arg1: i32) -> (i32, i32, i32) {
    %c0_i32 = arith.constant 0 : i32
    %c0_i32_0 = arith.constant 0 : i32
    return %arg0, %c0_i32, %arg1 : i32, i32, i32
  }
  func.func @transform_2(%arg0: i32, %arg1: i32) -> (i32, i32, i32) {
    %c0_i32 = arith.constant 0 : i32
    %c0_i32_0 = arith.constant 0 : i32
    return %arg0, %c0_i32, %arg1 : i32, i32, i32
  }
  func.func @transform_3(%arg0: i32, %arg1: i32) -> (i32, i32, i32) {
    %c0_i32 = arith.constant 0 : i32
    %c0_i32_0 = arith.constant 0 : i32
    %c0_i32_1 = arith.constant 0 : i32
    return %arg0, %c0_i32, %c0_i32_0 : i32, i32, i32
  }
  func.func @transform_4(%arg0: i32, %arg1: i32) -> (i32, i32, i32) {
    %c0_i32 = arith.constant 0 : i32
    %c0_i32_0 = arith.constant 0 : i32
    %c0_i32_1 = arith.constant 0 : i32
    return %arg0, %c0_i32, %c0_i32_0 : i32, i32, i32
  }
  func.func @transform_5(%arg0: i32, %arg1: i32) -> (i32, i32, i32) {
    %c0_i32 = arith.constant 0 : i32
    %c0_i32_0 = arith.constant 0 : i32
    %c0_i32_1 = arith.constant 0 : i32
    return %arg0, %c0_i32, %c0_i32_0 : i32, i32, i32
  }
}

</mosaic_0001>

<bundles_post_ra>
// kernel: tpu_custom_call.1
= control target key start
LH: loop header
LB: loop body
LE: loop exit
PB: predicated region body
PF: predicated region fallthrough
CT: control target
= control target key end

     0   :  { %10 = vsyncpa [#allocation3], 0  ;;  %s3165_s0 = inlined_call_operand.vmem [shape: f32[2,4,384], index: 0, kind: input, shape index: {}]   ;;  %s3166_s1 = inlined_call_operand.vmem [shape: f32[2,4,384], index: 1, kind: input, shape index: {}]   ;;  %s3167_s2 = inlined_call_operand.vmem [shape: f32[2,8,384], index: 2, kind: input, shape index: {}]   ;;  %s3168_s3 = inlined_call_operand.vmem [shape: f32[2,8,128], index: 3, kind: input, shape index: {}]   ;;  %s3169_s4 = inlined_call_operand.vmem [shape: f32[2,128,8], index: 4, kind: input, shape index: {}]   ;;  %s3170_s5 = inlined_call_operand.hbm [shape: f32[2,1,128], index: 5, kind: output, shape index: {}]  }
   0x1   :  { %12 = vsyncpa [#allocation3 + $0x1], 0  ;;  %s2143_s18 = smov 0   ;;  %s2145_s19 = smov 0  }
   0x2   :  { %s2147_s20 = smov 0   ;;  %s2149_s21 = smov 0  }
   0x3   :  { %s2151_s22 = smov 0   ;;  %s2153_s23 = smov 0  }
   0x4   :  { %s2155_s24 = smov 0   ;;  %s2157_s25 = smov 0  }
   0x5 LB: > { %3182 = sst [smem:[#allocation5_spill]] %s2090_s23  ;;  %s1748_s26 = sadd.s32 4294967295, %s2098_s25   ;;  %s2098_s25 = sphi %s2157_s25, %s18_s25   ;;  %s2094_s24 = sphi %s2155_s24, %s3214_s24   ;;  %s2090_s23 = sphi %s2153_s23, %s3213_s23   ;;  %s2086_s22 = sphi %s2151_s22, %s3212_s22   ;;  %s2082_s21 = sphi %s2149_s21, %s3211_s21   ;;  %s2078_s20 = sphi %s2147_s20, %s3217_s20   ;;  %s2074_s19 = sphi %s2145_s19, %s3216_s19   ;;  %s2070_s18 = sphi %s2143_s18, %s3215_s18  }
   0x6   : > { %3183 = sst [smem:[#allocation6_spill]] %s2094_s24  ;;  %s1749_s27 = sadd.s32 4294967294, %s2098_s25  }
   0x7   : > { %s27_s28 = sadd.s32 1, %s2090_s23  ;;  %s30_s29 = sadd.s32 1, %s2094_s24 }
   0x8   : > { %p28_p0 = scmp.ge.s32.totalorder %s27_s28, 3  ;;  %p183_p1 = scmp.ne.s32.totalorder %s2078_s20, %s2074_s19 }
   0x9   : > { %p184_p2 = scmp.eq.s32.totalorder %s1748_s26, 5  ;;  %p189_p4 = scmp.ne.s32.totalorder %s2074_s19, %s2070_s18 }
   0xa   : > { %s3219_s28 = smov (%p28_p0, %s27_s28), 0  ;;  %s3221_s29 = smov (!%p28_p0, %s30_s29), %s2094_s24 }
   0xb   : > { %3184 = sst [smem:[#allocation7_spill]] %s3219_s28  ;;  %p2192_p3 = por %p184_p2, %p183_p1 }
   0xc   : > { %p32_p5 = scmp.ge.s32.totalorder %s3221_s29, 2  ;;  %p190_p6 = scmp.eq.s32.totalorder %s1749_s27, 5 }
   0xd   : > { %p1752_p7 = scmp.ge.s32.totalorder %s2098_s25, 1  ;;  %p256_p8 = scmp.lt.s32.totalorder %s2098_s25, 7 }
   0xe   : > { %s3223_s29 = smov (%p32_p5, %s3221_s29), 0  ;;  %p2202_p9 = por %p190_p6, %p189_p4 }
   0xf   : > { %3186 = sst [smem:[#allocation8_spill]] %s3223_s29  ;;  %p257_p10 = pnand %p1752_p7, %p256_p8 }
  0x10   : > { %s170_s7 = ssub.s32 %s2094_s24, %s3223_s29  ;;  %s173_s8 = sadd.s32 1, %s2078_s20 }
  0x11   : > { %p171_p11 = scmp.eq.s32.totalorder %s170_s7, 0  ;;  %260 = sbr.rel (%p257_p10) target bundleno = 1028 (0x404), region = 40 }
  0x13   : > { %s2210_s9 = scalar_select %p171_p11, %s2078_s20, %s173_s8  }
  0x16   : > { %p311_p12 = scmp.lt.s32.totalorder %s2086_s22, 1  ;;  %p313_p13 = scmp.lt.s32.totalorder %s2082_s21, 2 }
  0x17   : > { %s3192_s23 = sand.u32 1, %s2074_s19   ;;  %p1759_p0 = scmp.ne.s32.totalorder %s2082_s21, 0 }
  0x18   : > { %s312_s11 = scalar_select %p311_p12, %s2086_s22, 1 }
  0x19   : > { %s314_s12 = scalar_select %p313_p13, %s2082_s21, 2 }
  0x1a   : > { %s1853_s13 = smul.u32 3, %s312_s11  ;;  %s1756_s14 = sshll.u32 %s312_s11, 3 }
  0x1b   : > { %s338_s17 = scalar_lea.vmem %s3168_s3, %s1756_s14  ;;  %s1800_s26 = sshll.u32 %s312_s11, 7 }
  0x1c   : > { %s316_s27 = sadd.s32 %s1853_s13, %s314_s12  ;;  %s343_s29 = scalar_lea.vmem %s3169_s4, %s1800_s26  ;;  %v2223_v0 = vld [vmem:[%s338_s17] sm:$0xff] }
  0x1d   : > { %3188 = vst [vmem:[#allocation9_spill] sm:$0xff] %v2223_v0  ;;  %s1753_s28 = sshll.u32 %s316_s27, 2  ;;  %s1755_s10 = sshll.u32 %s316_s27, 3  ;;  %v2225_v1 = vld [vmem:[%s343_s29] sm:$0xff]  ;;  %v2227_v2 = vld [vmem:[%s343_s29 + $0x8] sm:$0xff]  ;;  %v2229_v3 = vld [vmem:[%s343_s29 + $0x10] sm:$0xff] }
  0x1e   : > { %s318_s14 = scalar_lea.vmem %s3165_s0, %s1753_s28  ;;  %s326_s13 = scalar_lea.vmem %s3166_s1, %s1753_s28  ;;  %v2237_v4 = vld [vmem:[%s343_s29 + $0x18] sm:$0xff]  ;;  %v2239_v5 = vld [vmem:[%s343_s29 + $0x20] sm:$0xff]  ;;  %v2241_v6 = vld [vmem:[%s343_s29 + $0x28] sm:$0xff] }
  0x1f   : > { %s334_s17 = scalar_lea.vmem %s3167_s2, %s1755_s10  ;;  %v2246_v7 = vld [vmem:[%s318_s14] sm:$0xf]  ;;  %v2250_v9 = vld [vmem:[%s343_s29 + $0x30] sm:$0xff]  ;;  %v2254_v11 = vld [vmem:[%s343_s29 + $0x38] sm:$0xff]  ;;  %s2274_s24 = scalar_lea.vmem [#allocation2], %s3192_s23 }
  0x20   : > { %3189 = vst [vmem:[#allocation10_spill] sm:$0xff] %v2246_v7  ;;  %v2248_v8 = vld [vmem:[%s326_s13] sm:$0xf]  ;;  %v2258_v13 = vld [vmem:[%s343_s29 + $0x48] sm:$0xff]  ;;  %v2260_v14 = vld [vmem:[%s343_s29 + $0x50] sm:$0xff]  ;;  %367 = sbr.rel (%p1759_p0) target bundleno = 39 (0x27), region = 44 }
  0x21   : > { %3190 = vst [vmem:[#allocation11_spill] sm:$0xff] %v2248_v8  ;;  %v2252_v10 = vld [vmem:[%s334_s17] sm:$0xff]  ;;  %v2262_v15 = vld [vmem:[%s343_s29 + $0x58] sm:$0xff]  ;;  %v2266_v17 = vld [vmem:[%s343_s29 + $0x68] sm:$0xff] }
  0x22   : > { %3191 = vst [vmem:[#allocation12_spill] sm:$0xff] %v2252_v10  ;;  %v2256_v12 = vld [vmem:[%s343_s29 + $0x40] sm:$0xff]  ;;  %v2268_v18 = vld [vmem:[%s343_s29 + $0x70] sm:$0xff]  ;;  %v2270_v19 = vld [vmem:[%s343_s29 + $0x78] sm:$0xff] }
  0x23   : > { %v2264_v16 = vld [vmem:[%s343_s29 + $0x60] sm:$0xff] }
  0x25   : > { %v2100_v20 = vmov 0.0  }
  0x26   : > { %368 = vst [vmem:[%s2274_s24] sm:$0x1] %v2100_v20 }
  0x27 PF: > { %s2101_s28 = smov 2   ;;  %v3176_v21 = vmov 2   ;;  %v3174_v22 = vmov 0   ;;  %v2104_v23 = vmov 3   ;;  %v2105_v24 = vmov 1   ;;  %s2106_s29 = smov 127  }
  0x28   : > { %831 = vrot.lane.b32.xlu0 %v2225_v1, %s2101_s28  ;;  %835 = vrot.lane.b32.xlu1 %v2229_v3, %s2101_s28  ;;  %vm370_vm0 = vcmp.ne.f32.partialorder %v2227_v2, -1.0  ;;  %vm373_vm1 = vcmp.ne.f32.partialorder %v2239_v5, -1.0  ;;  %vm375_vm2 = vcmp.ne.f32.partialorder %v2250_v9, -1.0  ;;  %vm377_vm3 = vcmp.ne.f32.partialorder %v2256_v12, -1.0  ;;  %s1760_s10 = sshll.u32 %s2082_s21, 7  ;;  %s1797_s8 = sshll.u32 %s2086_s22, 4 }
  0x29   : > { %1947 = vset.pattern.permute.xlu1 %v3176_v21  ;;  %1949 = vset.pattern.permute.xlu0 %v3174_v22  ;;  %vm369_vm4 = vcmp.ne.f32.partialorder %v2225_v1, -1.0  ;;  %vm379_vm5 = vcmp.ne.f32.partialorder %v2260_v14, -1.0  ;;  %vm371_vm6 = vcmp.ne.f32.partialorder %v2229_v3, -1.0  ;;  %vm381_vm7 = vcmp.ne.f32.partialorder %v2264_v16, -1.0  ;;  %s1616_s14 = sshll.u32 %s2274_s24, 4  ;;  %s1614_s13 = scalar_lea.hbm %s3170_s5, %s1797_s8  ;;  %s1617_s14 = int_to_ptr.vmem [resolvable:$true] %s1616_s14 }
  0x2a   : > { %vm372_vm8 = vcmp.ne.f32.partialorder %v2237_v4, -1.0  ;;  %vm383_vm9 = vcmp.ne.f32.partialorder %v2268_v18, -1.0  ;;  %vm374_vm10 = vcmp.ne.f32.partialorder %v2241_v6, -1.0  ;;  %vm376_vm11 = vcmp.ne.f32.partialorder %v2254_v11, -1.0  ;;  %s3210_s15 = sand.u32 1, %s2074_s19   ;;  %s2006_s17 = scalar_lea.vmem %s1617_s14, 16 }
  0x2b   : > { %vm378_vm12 = vcmp.ne.f32.partialorder %v2258_v13, -1.0  ;;  %vm380_vm13 = vcmp.ne.f32.partialorder %v2262_v15, -1.0  ;;  %vm382_vm14 = vcmp.ne.f32.partialorder %v2266_v17, -1.0  ;;  %vm384_vm15 = vcmp.ne.f32.partialorder %v2270_v19, -1.0  ;;  %s1604_s16 = scalar_lea.sflag [#allocation3], %s3210_s15  ;;  %p2007_p1 = scmp.ne.s32.totalorder %s1617_s14, %s2006_s17 }
  0x2c   : > { %833 = vrot.lane.b32.xlu0 %v2227_v2, %s2101_s28  ;;  %837 = vrot.lane.b32.xlu1 %v2237_v4, %s2101_s28  ;;  %s2112_s23 = smov [#allocation2]  }
  0x2d   : > { %p2008_p2 = pnand %p2007_p1, %p2192_p3 }
  0x2f   : > { %p2009_p4 = pneg %p2008_p2 }
  0x30   : > { %839 = vrot.lane.b32.xlu0 %v2239_v5, %s2101_s28  ;;  %841 = vrot.lane.b32.xlu1 %v2241_v6, %s2101_s28 }
  0x34   : > { %843 = vrot.lane.b32.xlu0 %v2250_v9, %s2101_s28  ;;  %845 = vrot.lane.b32.xlu1 %v2254_v11, %s2101_s28 }
  0x38   : > { %847 = vrot.lane.b32.xlu0 %v2256_v12, %s2101_s28  ;;  %849 = vrot.lane.b32.xlu1 %v2258_v13, %s2101_s28 }
  0x3c   : > { %851 = vrot.lane.b32.xlu0 %v2260_v14, %s2101_s28  ;;  %853 = vrot.lane.b32.xlu1 %v2262_v15, %s2101_s28 }
  0x40   : > { %855 = vrot.lane.b32.xlu0 %v2264_v16, %s2101_s28  ;;  %857 = vrot.lane.b32.xlu1 %v2266_v17, %s2101_s28 }
  0x44   : > { %859 = vrot.lane.b32.xlu0 %v2268_v18, %s2101_s28  ;;  %861 = vrot.lane.b32.xlu1 %v2270_v19, %s2101_s28  ;;  %s2010_s28 = sshll.u32 %s2112_s23, 4  ;;  %s2011_s28 = int_to_ptr.vmem [resolvable:$false] %s2010_s28 }
  0x45   : > { %s2012_s22 = scalar_lea.vmem %s2011_s28, 32  ;;  %p2013_p5 = scmp.lt.s32.totalorder %s1617_s14, %s2011_s28 }
  0x46   : > { %p2014_p6 = scmp.lt.s32.totalorder %s2012_s22, %s2006_s17 }
  0x48   : > { %402 = vperm.xlu1 %1947, %v2227_v2   ;;  %500 = vperm.xlu0 %1949, %v2227_v2   ;;  %p2015_p7 = por %p2014_p6, %p2013_p5 }
  0x4a   : > { %p2016_p8 = pnand %p2015_p7, %p2009_p4 }
  0x4c   : > { %407 = vperm.xlu1 %1947, %v2229_v3   ;;  %512 = vperm.xlu0 %1949, %v2239_v5  }
  0x50   : > { %417 = vperm.xlu1 %1947, %v2239_v5   ;;  %520 = vperm.xlu0 %1949, %v2250_v9  }
  0x54   : > { %427 = vperm.xlu1 %1947, %v2250_v9  }
  0x58   : > { %1948 = vset.pattern.permute.xlu1 %v3174_v22 }
  0x59   : > { %496 = vperm.xlu1 %1948, %v2225_v1  }
  0x5d   : > { %504 = vperm.xlu1 %1948, %v2229_v3  }
  0x61   : > { %508 = vperm.xlu1 %1948, %v2237_v4  }
  0x65   : > { %516 = vperm.xlu1 %1948, %v2241_v6  }
  0x69   : > { %524 = vperm.xlu1 %1948, %v2254_v11  }
  0x6d   : > { %1950 = vset.pattern.permute.xlu1 %v2104_v23 }
  0x6e   : > { %616 = vperm.xlu1 %1950, %v2227_v2  }
  0x72   : > { %620 = vperm.xlu1 %1950, %v2229_v3  }
  0x76   : > { %628 = vperm.xlu1 %1950, %v2239_v5  }
  0x7a   : > { %636 = vperm.xlu1 %1950, %v2250_v9  }
  0x7e   : > { %1951 = vset.pattern.permute.xlu1 %v2105_v24 }
  0x7f   : > { %696 = vperm.xlu1 %1951, %v2225_v1  }
  0x9a   : > { %v832_v25 = vpop.permute.xlu0 %831  ;;  %v836_v26 = vpop.permute.xlu1 %835 }
  0x9b   : > { %v2317_v27 = vsub.f32 %v2225_v1, %v832_v25  ;;  %v2322_v28 = vsub.f32 %v2229_v3, %v836_v26 }
  0x9d   : > { %911 = vrot.lane.b32.xlu0 %v2317_v27, %s2106_s29 }
  0x9e   : > { %v834_v29 = vpop.permute.xlu0 %833  ;;  %v838_v30 = vpop.permute.xlu1 %837 }
  0x9f   : > { %v2325_v31 = vsub.f32 %v2227_v2, %v834_v29  ;;  %v2332_v32 = vsub.f32 %v2237_v4, %v838_v30 }
  0xa1   : > { %915 = vrot.lane.b32.xlu0 %v2322_v28, %s2106_s29  ;;  %913 = vrot.lane.b32.xlu1 %v2325_v31, %s2106_s29 }
  0xa2   : > { %v840_v33 = vpop.permute.xlu0 %839  ;;  %v842_v34 = vpop.permute.xlu1 %841 }
  0xa3   : > { %v2335_v35 = vsub.f32 %v2239_v5, %v840_v33  ;;  %v2342_v36 = vsub.f32 %v2241_v6, %v842_v34 }
  0xa5   : > { %919 = vrot.lane.b32.xlu0 %v2335_v35, %s2106_s29  ;;  %917 = vrot.lane.b32.xlu1 %v2332_v32, %s2106_s29 }
  0xa6   : > { %v844_v37 = vpop.permute.xlu0 %843  ;;  %v846_v38 = vpop.permute.xlu1 %845 }
  0xa7   : > { %v2345_v39 = vsub.f32 %v2250_v9, %v844_v37  ;;  %v2352_v40 = vsub.f32 %v2254_v11, %v846_v38 }
  0xa9   : > { %923 = vrot.lane.b32.xlu0 %v2345_v39, %s2106_s29  ;;  %921 = vrot.lane.b32.xlu1 %v2342_v36, %s2106_s29 }
  0xaa   : > { %v848_v41 = vpop.permute.xlu0 %847  ;;  %v850_v42 = vpop.permute.xlu1 %849 }
  0xab   : > { %v2355_v43 = vsub.f32 %v2256_v12, %v848_v41  ;;  %v2362_v44 = vsub.f32 %v2258_v13, %v850_v42 }
  0xad   : > { %927 = vrot.lane.b32.xlu0 %v2355_v43, %s2106_s29  ;;  %925 = vrot.lane.b32.xlu1 %v2352_v40, %s2106_s29 }
  0xae   : > { %v852_v45 = vpop.permute.xlu0 %851  ;;  %v854_v46 = vpop.permute.xlu1 %853 }
  0xaf   : > { %v2365_v47 = vsub.f32 %v2260_v14, %v852_v45  ;;  %v2372_v48 = vsub.f32 %v2262_v15, %v854_v46 }
  0xb1   : > { %931 = vrot.lane.b32.xlu0 %v2365_v47, %s2106_s29  ;;  %929 = vrot.lane.b32.xlu1 %v2362_v44, %s2106_s29 }
  0xb2   : > { %v856_v49 = vpop.permute.xlu0 %855  ;;  %v858_v50 = vpop.permute.xlu1 %857 }
  0xb3   : > { %v2375_v51 = vsub.f32 %v2264_v16, %v856_v49  ;;  %v2382_v52 = vsub.f32 %v2266_v17, %v858_v50 }
  0xb5   : > { %935 = vrot.lane.b32.xlu0 %v2375_v51, %s2106_s29  ;;  %933 = vrot.lane.b32.xlu1 %v2372_v48, %s2106_s29 }
  0xb6   : > { %v860_v53 = vpop.permute.xlu0 %859  ;;  %v862_v54 = vpop.permute.xlu1 %861 }
  0xb7   : > { %v2385_v55 = vsub.f32 %v2268_v18, %v860_v53  ;;  %v2392_v56 = vsub.f32 %v2270_v19, %v862_v54 }
  0xb9   : > { %939 = vrot.lane.b32.xlu0 %v2385_v55, %s2106_s29  ;;  %937 = vrot.lane.b32.xlu1 %v2382_v52, %s2106_s29 }
  0xbd   : > { %532 = vperm.xlu0 %1949, %v2258_v13   ;;  %941 = vrot.lane.b32.xlu1 %v2392_v56, %s2106_s29 }
  0xc1   : > { %548 = vperm.xlu0 %1949, %v2266_v17   ;;  %704 = vperm.xlu1 %1951, %v2229_v3  }
  0xc3   : > { %v2401_v57 = vpop.permute.xlu1 %402  ;;  %v2457_v30 = vpop.permute.xlu0 %500 }
  0xc5   : > { %1958 = vset.pattern.permute.xlu0 %v2104_v23  ;;  %708 = vperm.xlu1 %1951, %v2237_v4  }
  0xc6   : > { %612 = vperm.xlu0 %1958, %v2225_v1  }
  0xc7   : > { %v2406_v58 = vpop.permute.xlu1 %407  ;;  %v2464_v34 = vpop.permute.xlu0 %512 }
  0xc9   : > { %716 = vperm.xlu1 %1951, %v2241_v6  }
  0xca   : > { %624 = vperm.xlu0 %1958, %v2237_v4  }
  0xcb   : > { %v2411_v59 = vpop.permute.xlu1 %417  ;;  %v2471_v38 = vpop.permute.xlu0 %520 }
  0xcd   : > { %724 = vperm.xlu1 %1951, %v2254_v11  }
  0xce   : > { %632 = vperm.xlu0 %1958, %v2241_v6  }
  0xcf   : > { %v2417_v60 = vpop.permute.xlu1 %427 }
  0xd1   : > { %1952 = vset.pattern.permute.xlu1 %v3176_v21 }
  0xd2   : > { %640 = vperm.xlu0 %1958, %v2254_v11   ;;  %442 = vperm.xlu1 %1952, %v2258_v13  }
  0xd4   : > { %v2422_v61 = vpop.permute.xlu1 %496 }
  0xd6   : > { %644 = vperm.xlu0 %1958, %v2256_v12   ;;  %447 = vperm.xlu1 %1952, %v2260_v14  }
  0xd8   : > { %v2427_v62 = vpop.permute.xlu1 %504 }
  0xda   : > { %656 = vperm.xlu0 %1958, %v2262_v15   ;;  %1953 = vset.pattern.permute.xlu1 %v3174_v22 }
  0xdb   : > { %528 = vperm.xlu1 %1953, %v2256_v12  }
  0xdc   : > { %v2433_v63 = vpop.permute.xlu1 %508 }
  0xde   : > { %660 = vperm.xlu0 %1958, %v2264_v16  }
  0xdf   : > { %536 = vperm.xlu1 %1953, %v2260_v14  }
  0xe0   : > { %v2438_v20 = vpop.permute.xlu1 %516 }
  0xe2   : > { %672 = vperm.xlu0 %1958, %v2270_v19  }
  0xe3   : > { %540 = vperm.xlu1 %1953, %v2262_v15  }
  0xe4   : > { %v2443_v25 = vpop.permute.xlu1 %524 }
  0xe5   : > { %3193 = vst [vmem:[#allocation13_spill] sm:$0xff] %v2443_v25  ;;  %v3194_v25 = vmov 2  }
  0xe6   : > { %1960 = vset.pattern.permute.xlu0 %v2105_v24 }
  0xe7   : > { %700 = vperm.xlu0 %1960, %v2227_v2   ;;  %1954 = vset.pattern.permute.xlu1 %v2104_v23 }
  0xe8   : > { %648 = vperm.xlu1 %1954, %v2258_v13  }
  0xe9   : > { %v2448_v26 = vpop.permute.xlu1 %616 }
  0xeb   : > { %712 = vperm.xlu0 %1960, %v2239_v5  }
  0xec   : > { %652 = vperm.xlu1 %1954, %v2260_v14  }
  0xed   : > { %v2454_v29 = vpop.permute.xlu1 %620 }
  0xef   : > { %720 = vperm.xlu0 %1960, %v2250_v9  }
  0xf0   : > { %1955 = vset.pattern.permute.xlu1 %v2105_v24 }
  0xf1   : > { %728 = vperm.xlu1 %1955, %v2256_v12   ;;  %v2461_v33 = vpop.permute.xlu1 %628 }
  0xf3   : > { %732 = vperm.xlu0 %1960, %v2258_v13  }
  0xf5   : > { %736 = vperm.xlu1 %1955, %v2260_v14   ;;  %v2469_v37 = vpop.permute.xlu1 %636 }
  0xf7   : > { %748 = vperm.xlu0 %1960, %v2266_v17  }
  0xf9   : > { %740 = vperm.xlu1 %1955, %v2262_v15  }
  0xfa   : > { %v2475_v41 = vpop.permute.xlu1 %696 }
  0xfb   : > { %1962 = vset.pattern.permute.xlu0 %v3176_v21 }
  0xfc   : > { %397 = vperm.xlu0 %1962, %v2225_v1  }
  0xfd   : > { %1956 = vset.pattern.permute.xlu1 %v3176_v21 }
  0xfe   : > { %462 = vperm.xlu1 %1956, %v2266_v17  }
 0x100   : > { %412 = vperm.xlu0 %1962, %v2237_v4  }
 0x102   : > { %467 = vperm.xlu1 %1956, %v2268_v18  }
 0x104   : > { %422 = vperm.xlu0 %1962, %v2241_v6  }
 0x106   : > { %1957 = vset.pattern.permute.xlu1 %v3174_v22 }
 0x107   : > { %544 = vperm.xlu1 %1957, %v2264_v16  }
 0x108   : > { %432 = vperm.xlu0 %1962, %v2254_v11  }
 0x10b   : > { %552 = vperm.xlu1 %1957, %v2268_v18  }
 0x10c   : > { %437 = vperm.xlu0 %1962, %v2256_v12  }
 0x10f   : > { %v912_v42 = vpop.permute.xlu0 %911  ;;  %556 = vperm.xlu1 %1957, %v2270_v19  }
 0x110   : > { %452 = vperm.xlu0 %1962, %v2262_v15   ;;  %v959_v53 = vmul.f32 %v912_v42, %v2317_v27 }
 0x113   : > { %v916_v45 = vpop.permute.xlu0 %915  ;;  %1959 = vset.pattern.permute.xlu1 %v2104_v23  ;;  %v914_v46 = vpop.permute.xlu1 %913 }
 0x114   : > { %457 = vperm.xlu0 %1962, %v2264_v16   ;;  %664 = vperm.xlu1 %1959, %v2266_v17  }
 0x117   : > { %v920_v49 = vpop.permute.xlu0 %919  ;;  %v918_v50 = vpop.permute.xlu1 %917 }
 0x118   : > { %472 = vperm.xlu0 %1962, %v2270_v19   ;;  %668 = vperm.xlu1 %1959, %v2268_v18   ;;  %v962_v23 = vmul.f32 %v918_v50, %v2332_v32  ;;  %v961_v50 = vmul.f32 %v916_v45, %v2322_v28  ;;  %v2107_v45 = vmov 4  }
 0x11b   : > { %v922_v54 = vpop.permute.xlu1 %921  ;;  %v924_v22 = vpop.permute.xlu0 %923 }
 0x11c   : > { %981 = vperm.xlu0 %1962, %v959_v53   ;;  %1961 = vset.pattern.permute.xlu1 %v2105_v24  ;;  %v964_v8 = vmul.f32 %v922_v54, %v2342_v36  ;;  %v960_v24 = vmul.f32 %v914_v46, %v2325_v31 }
 0x11d   : > { %744 = vperm.xlu1 %1961, %v2264_v16  }
 0x11f   : > { %v926_v21 = vpop.permute.xlu1 %925  ;;  %v928_v10 = vpop.permute.xlu0 %927 }
 0x120   : > { %996 = vperm.xlu0 %1962, %v962_v23   ;;  %v966_v27 = vmul.f32 %v926_v21, %v2352_v40  ;;  %v963_v21 = vmul.f32 %v920_v49, %v2335_v35  ;;  %v967_v28 = vmul.f32 %v928_v10, %v2355_v43  ;;  %v3178_v35 = vlaneseq }
 0x121   : > { %752 = vperm.xlu1 %1961, %v2268_v18  }
 0x122   : > { %v2513_v2 = vshrl.u32 %v3178_v35, 7 }
 0x123   : > { %v930_v0 = vpop.permute.xlu1 %929  ;;  %v932_v53 = vpop.permute.xlu0 %931 }
 0x124   : > { %1006 = vperm.xlu0 %1962, %v964_v8   ;;  %v968_v32 = vmul.f32 %v930_v0, %v2362_v44  ;;  %v609_v43 = vsub.s32 3, %v2513_v2  ;;  %v693_v5 = vsub.s32 1, %v2513_v2 }
 0x125   : > { %756 = vperm.xlu1 %1961, %v2270_v19  }
 0x126   : > { %v2528_v9 = vrot.slane %v2246_v7, %v693_v5 }
 0x127   : > { %v934_v42 = vpop.permute.xlu1 %933  ;;  %v936_v54 = vpop.permute.xlu0 %935 }
 0x128   : > { %1016 = vperm.xlu0 %1962, %v966_v27   ;;  %v970_v8 = vmul.f32 %v934_v42, %v2372_v48  ;;  %v3195_v48 = vmov 0   ;;  %v2525_v42 = vrot.slane %v2246_v7, %v609_v43 }
 0x129   : > { %1963 = vset.pattern.permute.xlu1 %v3194_v25  ;;  %v965_v25 = vmul.f32 %v924_v22, %v2345_v39  ;;  %v969_v22 = vmul.f32 %v932_v53, %v2365_v47  ;;  %v1143_v10 = vsel %vm373_vm1, 1, %v3195_v48  ;;  %v971_v47 = vmul.f32 %v936_v54, %v2375_v51 }
 0x12a   : > { %986 = vperm.xlu1 %1963, %v960_v24   ;;  %v1145_v27 = vsel %vm375_vm2, 1, %v3195_v48  ;;  %v1147_v12 = vsel %vm377_vm3, 1, %v3195_v48  ;;  %v493_v54 = vsub.s32 0, %v2513_v2  ;;  %v1149_v14 = vsel %vm379_vm5, 1, %v3195_v48 }
 0x12b   : > { %v938_v36 = vpop.permute.xlu1 %937  ;;  %v940_v46 = vpop.permute.xlu0 %939  ;;  %v1141_v3 = vsel %vm371_vm6, 1, %v3195_v48  ;;  %v1153_v4 = vsel %vm383_vm9, 1, %v3195_v48  ;;  %v1154_v15 = vsel %vm384_vm15, 1, %v3195_v48 }
 0x12c   : > { %1026 = vperm.xlu0 %1962, %v968_v32   ;;  %v972_v31 = vmul.f32 %v938_v36, %v2382_v52  ;;  %v1140_v52 = vsel %vm370_vm0, 1, %v3195_v48  ;;  %v973_v24 = vmul.f32 %v940_v46, %v2385_v55  ;;  %v393_v36 = vsub.s32 2, %v2513_v2 }
 0x12d   : > { %v2552_v46 = vrot.slane %v2246_v7, %v493_v54  ;;  %v1148_v54 = vsel %vm378_vm12, 1, %v3195_v48  ;;  %vm2109_vm0 = vmmov 0  }
 0x12e   : > { %991 = vperm.xlu1 %1963, %v961_v50  }
 0x12f   : > { %v942_v40 = vpop.permute.xlu1 %941 }
 0x130   : > { %1036 = vperm.xlu0 %1962, %v970_v8   ;;  %v974_v0 = vmul.f32 %v942_v40, %v2392_v56 }
 0x132   : > { %1001 = vperm.xlu1 %1963, %v963_v21   ;;  %v1139_v21 = vsel %vm369_vm4, 1, %v3195_v48 }
 0x134   : > { %1046 = vperm.xlu0 %1962, %v972_v31  }
 0x136   : > { %1011 = vperm.xlu1 %1963, %v965_v25   ;;  %v2549_v25 = vrot.slane %v2246_v7, %v393_v36 }
 0x138   : > { %v2503_v44 = vpop.permute.xlu0 %532  ;;  %1056 = vperm.xlu0 %1962, %v974_v0  }
 0x139   : > { %v568_v16 = vmax.f32 %v2552_v46, %v2503_v44  ;;  %v1144_v44 = vsel %vm374_vm10, 1, %v3195_v48 }
 0x13a   : > { %1021 = vperm.xlu1 %1963, %v967_v28  }
 0x13c   : > { %v2508_v39 = vpop.permute.xlu0 %548  ;;  %1965 = vset.pattern.permute.xlu0 %v2107_v45  ;;  %v2510_v56 = vpop.permute.xlu1 %704 }
 0x13d   : > { %1159 = vperm.xlu0 %1965, %v1140_v52  }
 0x13e   : > { %1031 = vperm.xlu1 %1963, %v969_v22   ;;  %v1151_v22 = vsel %vm381_vm7, 1, %v3195_v48 }
 0x140   : > { %v709_v49 = vpop.permute.xlu1 %708 }
 0x141   : > { %v2520_v23 = vpop.permute.xlu0 %612  ;;  %1168 = vperm.xlu0 %1965, %v1143_v10   ;;  %v762_v51 = vmax.f32 %v2528_v9, %v709_v49  ;;  %v1142_v49 = vsel %vm372_vm8, 1, %v3195_v48 }
 0x142   : > { %1041 = vperm.xlu1 %1963, %v971_v47  }
 0x144   : > { %v717_v53 = vpop.permute.xlu1 %716 }
 0x145   : > { %v625_v32 = vpop.permute.xlu0 %624  ;;  %1174 = vperm.xlu0 %1965, %v1145_v27   ;;  %v764_v1 = vmax.f32 %v2528_v9, %v717_v53 }
 0x146   : > { %v678_v50 = vmin.f32 %v2525_v42, %v625_v32  ;;  %1051 = vperm.xlu1 %1963, %v973_v24   ;;  %v1146_v32 = vsel %vm376_vm11, 1, %v3195_v48 }
 0x148   : > { %v2538_v8 = vsub.f32 %v678_v50, %v762_v51  ;;  %v725_v55 = vpop.permute.xlu1 %724 }
 0x149   : > { %v633_v31 = vpop.permute.xlu0 %632  ;;  %1180 = vperm.xlu0 %1965, %v1147_v12  }
 0x14a   : > { %v680_v40 = vmin.f32 %v2525_v42, %v633_v31  ;;  %1964 = vset.pattern.permute.xlu1 %v2107_v45  ;;  %v766_v45 = vmax.f32 %v2528_v9, %v725_v55  ;;  %v1150_v31 = vsel %vm380_vm13, 1, %v3195_v48 }
 0x14b   : > { %1156 = vperm.xlu1 %1964, %v1139_v21  }
 0x14c   : > { %v2554_v0 = vsub.f32 %v680_v40, %v764_v1  ;;  %v1152_v40 = vsel %vm382_vm14, 1, %v3195_v48 }
 0x14d   : > { %v641_v28 = vpop.permute.xlu0 %640  ;;  %v443_v52 = vpop.permute.xlu1 %442  ;;  %1186 = vperm.xlu0 %1965, %v1149_v14  }
 0x14e   : > { %v682_v10 = vmin.f32 %v2525_v42, %v641_v28  ;;  %v484_v43 = vmin.f32 %v2549_v25, %v443_v52 }
 0x14f   : > { %1162 = vperm.xlu1 %1964, %v1141_v3  }
 0x150   : > { %v2565_v5 = vsub.f32 %v682_v10, %v766_v45  ;;  %v584_v47 = vsub.f32 %v484_v43, %v568_v16 }
 0x151   : > { %v645_v27 = vpop.permute.xlu0 %644  ;;  %v448_v24 = vpop.permute.xlu1 %447  ;;  %1192 = vperm.xlu0 %1965, %v1151_v22  }
 0x152   : > { %v485_v6 = vmin.f32 %v2549_v25, %v448_v24  ;;  %v683_v17 = vmin.f32 %v2525_v42, %v645_v27 }
 0x153   : > { %1165 = vperm.xlu1 %1964, %v1142_v49  }
 0x155   : > { %v657_v53 = vpop.permute.xlu0 %656  ;;  %1198 = vperm.xlu0 %1965, %v1153_v4  }
 0x156   : > { %v2572_v18 = vpop.permute.xlu1 %528  ;;  %v686_v27 = vmin.f32 %v2525_v42, %v657_v53 }
 0x157   : > { %1171 = vperm.xlu1 %1964, %v1144_v44   ;;  %v600_v44 = vmax.f32 %v584_v47, 0.0  ;;  %v572_v47 = vmax.f32 %v2552_v46, %v2508_v39 }
 0x159   : > { %v2575_v51 = vpop.permute.xlu0 %660 }
 0x15a   : > { %v537_v50 = vpop.permute.xlu1 %536 }
 0x15b   : > { %v569_v12 = vmax.f32 %v2552_v46, %v537_v50  ;;  %1177 = vperm.xlu1 %1964, %v1146_v32  }
 0x15d   : > { %v585_v55 = vsub.f32 %v485_v6, %v569_v12  ;;  %v2581_v21 = vpop.permute.xlu0 %672 }
 0x15e   : > { %v2584_v11 = vpop.permute.xlu1 %540 }
 0x15f   : > { %1183 = vperm.xlu1 %1964, %v1148_v54   ;;  %v601_v12 = vmax.f32 %v585_v55, 0.0 }
 0x162   : > { %v2588_v13 = vpop.permute.xlu0 %700 }
 0x163   : > { %v649_v1 = vpop.permute.xlu1 %648  ;;  %1189 = vperm.xlu1 %1964, %v1150_v31  }
 0x164   : > { %v684_v45 = vmin.f32 %v2525_v42, %v649_v1 }
 0x166   : > { %v2592_v14 = vpop.permute.xlu0 %712 }
 0x167   : > { %v653_v3 = vpop.permute.xlu1 %652  ;;  %1195 = vperm.xlu1 %1964, %v1152_v40  }
 0x168   : > { %v685_v49 = vmin.f32 %v2525_v42, %v653_v3 }
 0x16a   : > { %v2595_v28 = vpop.permute.xlu0 %720 }
 0x16b   : > { %1201 = vperm.xlu1 %1964, %v1154_v15  }
 0x16c   : > { %v729_v52 = vpop.permute.xlu1 %728 }
 0x16d   : > { %v767_v22 = vmax.f32 %v2528_v9, %v729_v52 }
 0x16e   : > { %v733_v16 = vpop.permute.xlu0 %732 }
 0x16f   : > { %v783_v10 = vsub.f32 %v683_v17, %v767_v22  ;;  %v768_v19 = vmax.f32 %v2528_v9, %v733_v16 }
 0x170   : > { %v737_v43 = vpop.permute.xlu1 %736 }
 0x171   : > { %v784_v24 = vsub.f32 %v684_v45, %v768_v19  ;;  %v769_v48 = vmax.f32 %v2528_v9, %v737_v43  ;;  %v3179_v43 = vmov 0.0  }
 0x172   : > { %v749_v4 = vpop.permute.xlu0 %748  ;;  %1818 = vmatprep.subr.mxu0 %v3179_v43 }
 0x173   : > { %v800_v32 = vmax.f32 %v784_v24, 0.0  ;;  %v785_v50 = vsub.f32 %v685_v49, %v769_v48 }
 0x174   : > { %v741_v6 = vpop.permute.xlu1 %740 }
 0x175   : > { %v801_v54 = vmax.f32 %v785_v50, 0.0  ;;  %v770_v31 = vmax.f32 %v2528_v9, %v741_v6  ;;  %v2605_v1 = vmul.f32 %v800_v32, %v600_v44  ;;  %v567_v44 = vmax.f32 %v2552_v46, %v2572_v18 }
 0x177   : > { %v786_v40 = vsub.f32 %v686_v27, %v770_v31  ;;  %v2607_v15 = vpop.permute.xlu0 %397  ;;  %v2609_v3 = vmul.f32 %v801_v54, %v601_v12  ;;  %v570_v54 = vmax.f32 %v2552_v46, %v2584_v11  ;;  %v799_v31 = vmax.f32 %v783_v10, 0.0 }
 0x179   : > { %v463_v52 = vpop.permute.xlu1 %462 }
 0x17a   : > { %v488_v17 = vmin.f32 %v2549_v25, %v463_v52 }
 0x17b   : > { %v2614_v22 = vpop.permute.xlu0 %412 }
 0x17c   : > { %v588_v53 = vsub.f32 %v488_v17, %v572_v47 }
 0x17d   : > { %v468_v55 = vpop.permute.xlu1 %467 }
 0x17e   : > { %v489_v24 = vmin.f32 %v2549_v25, %v468_v55  ;;  %v604_v10 = vmax.f32 %v588_v53, 0.0 }
 0x17f   : > { %v2616_v16 = vpop.permute.xlu0 %422 }
 0x182   : > { %v545_v45 = vpop.permute.xlu1 %544 }
 0x183   : > { %v2618_v19 = vpop.permute.xlu0 %432 }
 0x186   : > { %v553_v49 = vpop.permute.xlu1 %552 }
 0x187   : > { %v573_v48 = vmax.f32 %v2552_v46, %v553_v49  ;;  %v438_v39 = vpop.permute.xlu0 %437 }
 0x188   : > { %v483_v32 = vmin.f32 %v2549_v25, %v438_v39  ;;  %v772_v39 = vmax.f32 %v2528_v9, %v749_v4  ;;  %v571_v4 = vmax.f32 %v2552_v46, %v545_v45 }
 0x189   : > { %v2626_v50 = vsub.f32 %v489_v24, %v573_v48  ;;  %v802_v24 = vmax.f32 %v786_v40, 0.0 }
 0x18a   : > { %v583_v27 = vsub.f32 %v483_v32, %v567_v44  ;;  %v2628_v6 = vpop.permute.xlu1 %556 }
 0x18b   : > { %v453_v12 = vpop.permute.xlu0 %452 }
 0x18c   : > { %v599_v52 = vmax.f32 %v583_v27, 0.0  ;;  %v486_v47 = vmin.f32 %v2549_v25, %v453_v12 }
 0x18e   : > { %v586_v17 = vsub.f32 %v486_v47, %v570_v54  ;;  %v2633_v55 = vmul.f32 %v799_v31, %v599_v52  ;;  %v824_v54 = vrot.slane %v2246_v7, 6  ;;  %v687_v47 = vmin.f32 %v2525_v42, %v2575_v51 }
 0x18f   : > { %v458_v49 = vpop.permute.xlu0 %457  ;;  %v665_v18 = vpop.permute.xlu1 %664  ;;  %v475_v51 = vmin.f32 %v2549_v25, %v2607_v15 }
 0x190   : > { %v602_v48 = vmax.f32 %v586_v17, 0.0  ;;  %v688_v44 = vmin.f32 %v2525_v42, %v665_v18  ;;  %v487_v12 = vmin.f32 %v2549_v25, %v458_v49 }
 0x192   : > { %v788_v32 = vsub.f32 %v688_v44, %v772_v39  ;;  %v2637_v35 = vmul.f32 %v802_v24, %v602_v48  ;;  %v587_v17 = vsub.f32 %v487_v12, %v571_v4  ;;  %v2652_v39 = vsub.f32 %v2246_v7, %v824_v54 }
 0x193   : > { %v2639_v43 = vpop.permute.xlu0 %472  ;;  %v2641_v11 = vpop.permute.xlu1 %668  ;;  %v559_v12 = vmax.f32 %v2552_v46, %v2422_v61  ;;  %v675_v54 = vmin.f32 %v2525_v42, %v2520_v23  ;;  %v763_v4 = vmax.f32 %v2528_v9, %v2592_v14  ;;  %v759_v61 = vmax.f32 %v2528_v9, %v2475_v41 }
 0x194   : > { %v804_v27 = vmax.f32 %v788_v32, 0.0  ;;  %v603_v48 = vmax.f32 %v587_v17, 0.0  ;;  %v828_v45 = vrot.slane %v2652_v39, 1  ;;  %v563_v17 = vmax.f32 %v2552_v46, %v2464_v34 }
 0x195   : > { %v761_v23 = vmax.f32 %v2528_v9, %v2510_v56  ;;  %v575_v14 = vsub.f32 %v475_v51, %v559_v12  ;;  %v765_v34 = vmax.f32 %v2528_v9, %v2595_v28  ;;  %v481_v56 = vmin.f32 %v2549_v25, %v2417_v60 }
 0x196   : > { %v2645_v31 = vmul.f32 %v804_v27, %v604_v10  ;;  %v476_v60 = vmin.f32 %v2549_v25, %v2401_v57 }
 0x197   : > { %v982_v40 = vpop.permute.xlu0 %981 }
 0x198   : > { %v745_v52 = vpop.permute.xlu1 %744 }
 0x199   : > { %v771_v18 = vmax.f32 %v2528_v9, %v745_v52  ;;  %v830_v52 = vmul.f32 %v828_v45, %v2652_v39 }
 0x19b   : > { %v787_v53 = vsub.f32 %v687_v47, %v771_v18  ;;  %v2654_v24 = vpop.permute.xlu0 %996  ;;  %v479_v47 = vmin.f32 %v2549_v25, %v2411_v59  ;;  %v679_v18 = vmin.f32 %v2525_v42, %v2461_v33  ;;  %v561_v59 = vmax.f32 %v2552_v46, %v2427_v62 }
 0x19c   : > { %v2656_v49 = vpop.permute.xlu1 %752  ;;  %v677_v33 = vmin.f32 %v2525_v42, %v2454_v29  ;;  %v2696_v41 = vrot.slane %v830_v52, %v393_v36  ;;  %v681_v62 = vmin.f32 %v2525_v42, %v2469_v37  ;;  %v591_v29 = vmax.f32 %v575_v14, 0.0 }
 0x19d   : > { %v803_v44 = vmax.f32 %v787_v53, 0.0  ;;  %v477_v53 = vmin.f32 %v2549_v25, %v2406_v58  ;;  %v779_v45 = vsub.f32 %v679_v18, %v763_v4  ;;  %v565_v58 = vmax.f32 %v2552_v46, %v2471_v38 }
 0x19e   : > { %v579_v51 = vsub.f32 %v479_v47, %v563_v17  ;;  %v777_v12 = vsub.f32 %v677_v33, %v761_v23  ;;  %v760_v4 = vmax.f32 %v2528_v9, %v2588_v13  ;;  %v781_v36 = vsub.f32 %v681_v62, %v765_v34 }
 0x19f   : > { %v2659_v32 = vpop.permute.xlu0 %1006  ;;  %v2661_v10 = vmul.f32 %v803_v44, %v603_v48  ;;  %v775_v44 = vsub.f32 %v675_v54, %v759_v61  ;;  %v577_v54 = vsub.f32 %v477_v53, %v561_v59  ;;  %v795_v61 = vmax.f32 %v779_v45, 0.0 }
 0x1a0   : > { %v2665_v27 = vpop.permute.xlu1 %756  ;;  %v1059_v38 = vadd.f32 %v982_v40, %v2696_v41  ;;  %v560_v37 = vmax.f32 %v2552_v46, %v2457_v30  ;;  %v581_v7 = vsub.f32 %v481_v56, %v565_v58  ;;  %v676_v47 = vmin.f32 %v2525_v42, %v2448_v26 }
 0x1a1   : > { %v791_v18 = vmax.f32 %v775_v44, 0.0  ;;  %v480_v17 = vmin.f32 %v2549_v25, %v2616_v16  ;;  %v595_v23 = vmax.f32 %v579_v51, 0.0  ;;  %v793_v14 = vmax.f32 %v777_v12, 0.0 }
 0x1a2   : > { %v593_v57 = vmax.f32 %v577_v54, 0.0  ;;  %v564_v40 = vmax.f32 %v2552_v46, %v2438_v20  ;;  %v776_v59 = vsub.f32 %v676_v47, %v760_v4  ;;  %v797_v34 = vmax.f32 %v781_v36, 0.0  ;;  %v3196_v4 = vld [vmem:[#allocation13_spill] sm:$0xff] }
 0x1a3   : > { %v2678_v15 = vpop.permute.xlu0 %1016  ;;  %v2719_v53 = vmul.f32 %v791_v18, %v591_v29  ;;  %v2725_v44 = vmul.f32 %v795_v61, %v595_v23  ;;  %v576_v45 = vsub.f32 %v476_v60, %v560_v37  ;;  %v597_v56 = vmax.f32 %v581_v7, 0.0 }
 0x1a4   : > { %v478_v58 = vmin.f32 %v2549_v25, %v2614_v22  ;;  %v580_v62 = vsub.f32 %v480_v17, %v564_v40  ;;  %v482_v20 = vmin.f32 %v2549_v25, %v2618_v19  ;;  %v2734_v12 = vmul.f32 %v793_v14, %v593_v57 }
 0x1a5   : > { %v987_v48 = vpop.permute.xlu1 %986  ;;  %v1075_v33 = vsub.f32 %v1059_v38, %v2719_v53  ;;  %v562_v54 = vmax.f32 %v2552_v46, %v2433_v63  ;;  %v566_v36 = vmax.f32 %v2552_v46, %v3196_v4  ;;  %v792_v7 = vmax.f32 %v776_v59, 0.0 }
 0x1a6   : > { %v2741_v60 = vmul.f32 %v797_v34, %v597_v56  ;;  %v592_v38 = vmax.f32 %v576_v45, 0.0  ;;  %v596_v47 = vmax.f32 %v580_v62, 0.0  ;;  %v1060_v17 = vadd.f32 %v987_v48, %v2696_v41 }
 0x1a7   : > { %v2704_v28 = vpop.permute.xlu0 %1026  ;;  %v1091_v22 = vmax.f32 %v1075_v33, 1e-08  ;;  %v578_v37 = vsub.f32 %v478_v58, %v562_v54  ;;  %v794_v63 = vmax.f32 %v2538_v8, 0.0  ;;  %v582_v14 = vsub.f32 %v482_v20, %v566_v36 }
 0x1a8   : > { %v796_v40 = vmax.f32 %v2554_v0, 0.0  ;;  %v773_v59 = vmax.f32 %v2528_v9, %v2656_v49  ;;  %v1064_v34 = vadd.f32 %v2659_v32, %v2696_v41  ;;  %v689_v45 = vmin.f32 %v2525_v42, %v2641_v11 }
 0x1a9   : > { %v992_v52 = vpop.permute.xlu1 %991  ;;  %v798_v49 = vmax.f32 %v2565_v5, 0.0  ;;  %v598_v58 = vmax.f32 %v582_v14, 0.0  ;;  %v1062_v20 = vadd.f32 %v2654_v24, %v2696_v41  ;;  %v1066_v11 = vadd.f32 %v2678_v15, %v2696_v41 }
 0x1aa   : > { %v1061_v26 = vadd.f32 %v992_v52, %v2696_v41  ;;  %v2760_v56 = vmul.f32 %v796_v40, %v596_v47  ;;  %v1068_v24 = vadd.f32 %v2704_v28, %v2696_v41  ;;  %v605_v15 = vmax.f32 %v2626_v50, 0.0 }
 0x1ab   : > { %v2717_v13 = vpop.permute.xlu0 %1036  ;;  %v490_v28 = vmin.f32 %v2549_v25, %v2639_v43  ;;  %v774_v40 = vmax.f32 %v2528_v9, %v2665_v27  ;;  %v690_v50 = vmin.f32 %v2525_v42, %v2581_v21 }
 0x1ac   : > { %v1077_v18 = vsub.f32 %v1061_v26, %v2734_v12  ;;  %v1080_v54 = vsub.f32 %v1064_v34, %v2760_v56  ;;  %v1070_v25 = vadd.f32 %v2717_v13, %v2696_v41 }
 0x1ad   : > { %v1002_v30 = vpop.permute.xlu1 %1001 }
 0x1ae   : > { %v1063_v16 = vadd.f32 %v1002_v30, %v2696_v41  ;;  %v2755_v30 = vmul.f32 %v792_v7, %v592_v38  ;;  %v1093_v48 = vmax.f32 %v1077_v18, 1e-08  ;;  %v3197_v7 = vmov 0.0  }
 0x1af   : > { %v2730_v51 = vpop.permute.xlu0 %1046  ;;  %1850 = vmatprep.mubr.msk.f32.mxu0 %vm2109_vm0, %v3197_v7  ;;  %v2778_v18 = vmul.f32 %v798_v49, %v598_v58  ;;  %v1086_v13 = vsub.f32 %v1070_v25, %v2637_v35 }
 0x1b0   : > { %v1079_v29 = vsub.f32 %v1063_v16, %v2725_v44  ;;  %v594_v16 = vmax.f32 %v578_v37, 0.0  ;;  %v1076_v0 = vsub.f32 %v1060_v17, %v2755_v30  ;;  %v1096_v17 = vmax.f32 %v1080_v54, 1e-08 }
 0x1b1   : > { %v1012_v52 = vpop.permute.xlu1 %1011 }
 0x1b2   : > { %v1095_v61 = vmax.f32 %v1079_v29, 1e-08  ;;  %v1065_v19 = vadd.f32 %v1012_v52, %v2696_v41  ;;  %v789_v29 = vsub.f32 %v689_v45, %v773_v59  ;;  %v2774_v52 = vmul.f32 %v794_v63, %v594_v16 }
 0x1b3   : > { %v2746_v23 = vpop.permute.xlu0 %1056  ;;  %v1082_v63 = vsub.f32 %v1066_v11, %v2778_v18  ;;  %v1084_v59 = vsub.f32 %v1068_v24, %v2605_v1 }
 0x1b4   : > { %1966 = vrcp.f32 %v1095_v61  ;;  %v1081_v57 = vsub.f32 %v1065_v19, %v2741_v60  ;;  %v1078_v38 = vsub.f32 %v1062_v20, %v2774_v52  ;;  %v805_v37 = vmax.f32 %v789_v29, 0.0 }
 0x1b5   : > { %v1022_v33 = vpop.permute.xlu1 %1021  ;;  %1968 = vrcp.f32 %v1091_v22  ;;  %v1092_v22 = vmax.f32 %v1076_v0, 1e-08  ;;  %v1098_v27 = vmax.f32 %v1082_v63, 1e-08  ;;  %v790_v0 = vsub.f32 %v690_v50, %v774_v40 }
 0x1b6   : > { %v1097_v26 = vmax.f32 %v1081_v57, 1e-08  ;;  %v1067_v8 = vadd.f32 %v1022_v33, %v2696_v41  ;;  %v2797_v9 = vmul.f32 %v805_v37, %v605_v15  ;;  %v1100_v49 = vmax.f32 %v1084_v59, 1e-08 }
 0x1b7   : > { %v1072_v20 = vadd.f32 %v2730_v51, %v2696_v41  ;;  %v1102_v15 = vmax.f32 %v1086_v13, 1e-08 }
 0x1b8   : > { %1970 = vrcp.f32 %v1097_v26  ;;  %v1083_v32 = vsub.f32 %v1067_v8, %v2633_v55  ;;  %v2765_v62 = vpop.permute.xlu0 %1159  ;;  %v574_v26 = vmax.f32 %v2552_v46, %v2628_v6  ;;  %v1094_v8 = vmax.f32 %v1078_v38, 1e-08 }
 0x1b9   : > { %v1032_v4 = vpop.permute.xlu1 %1031  ;;  %1972 = vrcp.f32 %v1093_v48  ;;  %v1088_v51 = vsub.f32 %v1072_v20, %v2645_v31  ;;  %v1074_v38 = vadd.f32 %v2746_v23, %v2696_v41  ;;  %vm1204_vm7 = vcmp.eq.s32.totalorder %v2765_v62, 1 }
 0x1ba   : > { %v1099_v36 = vmax.f32 %v1083_v32, 1e-08  ;;  %v1069_v5 = vadd.f32 %v1032_v4, %v2696_v41  ;;  %v590_v45 = vsub.f32 %v490_v28, %v574_v26 }
 0x1bc   : > { %1974 = vrcp.f32 %v1099_v36  ;;  %v1085_v61 = vsub.f32 %v1069_v5, %v2609_v3  ;;  %v1169_v19 = vpop.permute.xlu0 %1168  ;;  %v606_v36 = vmax.f32 %v590_v45, 0.0 }
 0x1bd   : > { %v1042_v47 = vpop.permute.xlu1 %1041  ;;  %1976 = vrcp.f32 %v1092_v22  ;;  %vm1207_vm1 = vcmp.eq.s32.totalorder %v1169_v19, 1 }
 0x1be   : > { %v1101_v14 = vmax.f32 %v1085_v61, 1e-08  ;;  %v1071_v57 = vadd.f32 %v1042_v47, %v2696_v41 }
 0x1c0   : > { %1978 = vrcp.f32 %v1101_v14  ;;  %v1087_v34 = vsub.f32 %v1071_v57, %v2661_v10  ;;  %v1175_v33 = vpop.permute.xlu0 %1174 }
 0x1c1   : > { %v1967_v48 = vpop.eup %1966  ;;  %v1052_v43 = vpop.permute.xlu1 %1051  ;;  %1980 = vrcp.f32 %v1096_v17  ;;  %vm1209_vm3 = vcmp.eq.s32.totalorder %v1175_v33, 1 }
 0x1c2   : > { %v1103_v16 = vmax.f32 %v1087_v34, 1e-08  ;;  %v1073_v42 = vadd.f32 %v1052_v43, %v2696_v41  ;;  %v1969_v21 = vpop.eup %1968  ;;  %v1116_v58 = vmul.f32 %v1967_v48, %v2725_v44  ;;  %v806_v44 = vmax.f32 %v790_v0, 0.0 }
 0x1c3   : > { %v1108_v54 = vmul.f32 %v1969_v21, %v2719_v53 }
 0x1c4   : > { %1982 = vrcp.f32 %v1103_v16  ;;  %v1089_v46 = vsub.f32 %v1073_v42, %v2797_v9  ;;  %v1181_v6 = vpop.permute.xlu0 %1180  ;;  %v2806_v5 = vsel %vm1207_vm1, %v1116_v58, -1.0  ;;  %v2818_v63 = vmul.f32 %v806_v44, %v606_v36 }
 0x1c5   : > { %v1971_v32 = vpop.eup %1970  ;;  %1984 = vrcp.f32 %v1094_v8  ;;  %vm1211_vm4 = vcmp.eq.s32.totalorder %v1181_v6, 1 }
 0x1c6   : > { %1986 = vrcp.f32 %v1098_v27  ;;  %v1105_v29 = vmax.f32 %v1089_v46, 1e-08  ;;  %v1157_v4 = vpop.permute.xlu1 %1156  ;;  %v1973_v11 = vpop.eup %1972  ;;  %v1120_v22 = vmul.f32 %v1971_v32, %v2741_v60  ;;  %v1090_v23 = vsub.f32 %v1074_v38, %v2818_v63 }
 0x1c7   : > { %1988 = vrcp.f32 %v1100_v49  ;;  %vm1203_vm2 = vcmp.eq.s32.totalorder %v1157_v4, 1  ;;  %v1112_v60 = vmul.f32 %v1973_v11, %v2734_v12  ;;  %v1104_v12 = vmax.f32 %v1088_v51, 1e-08 }
 0x1c8   : > { %1990 = vrcp.f32 %v1105_v29  ;;  %v2809_v24 = vsel %vm1203_vm2, %v1108_v54, -1.0  ;;  %v1187_v61 = vpop.permute.xlu0 %1186  ;;  %v2820_v14 = vsel %vm1209_vm3, %v1120_v22, -1.0  ;;  %v1106_v27 = vmax.f32 %v1090_v23, 1e-08 }
 0x1c9   : > { %v1975_v19 = vpop.eup %1974  ;;  %v1235_v53 = vmax.f32 %v2809_v24, %v2806_v5  ;;  %vm1213_vm6 = vcmp.eq.s32.totalorder %v1187_v61, 1  ;;  %1992 = vrcp.f32 %v1102_v15 }
 0x1ca   : > { %v1124_v37 = vmul.f32 %v1975_v19, %v2633_v55  ;;  %v1163_v47 = vpop.permute.xlu1 %1162  ;;  %v1977_v17 = vpop.eup %1976  ;;  %1994 = vrcp.f32 %v1104_v12 }
 0x1cb   : > { %vm1205_vm5 = vcmp.eq.s32.totalorder %v1163_v47, 1  ;;  %v1110_v48 = vmul.f32 %v1977_v17, %v2755_v30  ;;  %1996 = vrcp.f32 %v1106_v27 }
 0x1cc   : > { %v2822_v57 = vsel %vm1211_vm4, %v1124_v37, -1.0  ;;  %v2824_v28 = vsel %vm1205_vm5, %v1112_v60, -1.0  ;;  %v1193_v50 = vpop.permute.xlu0 %1192  ;;  %1998 = vrcp.f32 %v2652_v39 }
 0x1cd   : > { %v1979_v40 = vpop.eup %1978  ;;  %v1237_v41 = vmax.f32 %v2824_v28, %v2820_v14  ;;  %v2829_v55 = vmax.f32 %v1235_v53, %v2822_v57  ;;  %vm1215_vm8 = vcmp.eq.s32.totalorder %v1193_v50, 1  ;;  %v2840_v30 = vsel %vm1204_vm7, %v1110_v48, -1.0 }
 0x1ce   : > { %v1128_v59 = vmul.f32 %v1979_v40, %v2609_v3  ;;  %v1166_v34 = vpop.permute.xlu1 %1165  ;;  %v1981_v33 = vpop.eup %1980  ;;  %v3198_v48 = vlaneseq }
 0x1cf   : > { %v1118_v42 = vmul.f32 %v1981_v33, %v2760_v56  ;;  %vm1206_vm10 = vcmp.eq.s32.totalorder %v1166_v34, 1  ;;  %v2877_v34 = vadd.s32 8, %v2513_v2  ;;  %v2880_v33 = vadd.s32 16, %v2513_v2 }
 0x1d0   : > { %v2834_v26 = vsel %vm1213_vm6, %v1128_v59, -1.0  ;;  %v1199_v49 = vpop.permute.xlu0 %1198 }
 0x1d1   : > { %v1983_v8 = vpop.eup %1982  ;;  %v1241_v25 = vmax.f32 %v1237_v41, %v2834_v26  ;;  %vm1217_vm11 = vcmp.eq.s32.totalorder %v1199_v49, 1  ;;  %v2907_v49 = vadd.s32 80, %v2513_v2 }
 0x1d2   : > { %v1985_v43 = vpop.eup %1984  ;;  %v1132_v16 = vmul.f32 %v1983_v8, %v2661_v10  ;;  %v1172_v3 = vpop.permute.xlu1 %1171  ;;  %v2886_v8 = vand.u32 127, %v3198_v48 }
 0x1d3   : > { %v1987_v21 = vpop.eup %1986  ;;  %vm1208_vm9 = vcmp.eq.s32.totalorder %v1172_v3, 1  ;;  %v1114_v56 = vmul.f32 %v1985_v43, %v2774_v52  ;;  %v2892_v43 = vadd.s32 40, %v2513_v2  ;;  %v2898_v3 = vadd.s32 56, %v2513_v2 }
 0x1d4   : > { %v1989_v45 = vpop.eup %1988  ;;  %v2842_v0 = vsel %vm1215_vm8, %v1132_v16, -1.0  ;;  %v2844_v62 = vsel %vm1208_vm9, %v1118_v42, -1.0  ;;  %v1122_v32 = vmul.f32 %v1987_v21, %v2778_v18  ;;  %v388_v16 = vstv %s1760_s10 }
 0x1d5   : > { %v1991_v58 = vpop.eup %1990  ;;  %v1243_v46 = vmax.f32 %v2829_v55, %v2842_v0  ;;  %v1236_v10 = vmax.f32 %v2840_v30, %v2844_v62  ;;  %v2853_v20 = vsel %vm1206_vm10, %v1114_v56, -1.0  ;;  %v1126_v52 = vmul.f32 %v1989_v45, %v2605_v1 }
 0x1d6   : > { %v1136_v6 = vmul.f32 %v1991_v58, %v2797_v9  ;;  %v1178_v13 = vpop.permute.xlu1 %1177  ;;  %v1993_v9 = vpop.eup %1992  ;;  %v2895_v42 = vadd.s32 48, %v2513_v2  ;;  %v2901_v21 = vadd.s32 64, %v2513_v2  ;;  %v2904_v45 = vadd.s32 72, %v2513_v2 }
 0x1d7   : > { %vm1210_vm12 = vcmp.eq.s32.totalorder %v1178_v13, 1  ;;  %v1130_v22 = vmul.f32 %v1993_v9, %v2637_v35  ;;  %v1995_v19 = vpop.eup %1994  ;;  %v2910_v58 = vadd.s32 88, %v2513_v2  ;;  %v2918_v56 = vadd.s32 104, %v2513_v2 }
 0x1d8   : > { %v2855_v29 = vsel %vm1217_vm11, %v1136_v6, -1.0  ;;  %v2857_v54 = vsel %vm1210_vm12, %v1122_v32, -1.0  ;;  %v1134_v51 = vmul.f32 %v1995_v19, %v2645_v31  ;;  %v1997_v1 = vpop.eup %1996  ;;  %v2921_v6 = vadd.s32 112, %v2513_v2 }
 0x1d9   : > { %v1245_v4 = vmax.f32 %v1241_v25, %v2855_v29  ;;  %v1238_v11 = vmax.f32 %v2853_v20, %v2857_v54  ;;  %v1138_v47 = vmul.f32 %v1997_v1, %v2818_v63  ;;  %v2883_v63 = vadd.s32 24, %v2513_v2 }
 0x1da   : > { %v1184_v36 = vpop.permute.xlu1 %1183  ;;  %v2889_v25 = vadd.s32 32, %v2513_v2  ;;  %v2924_v32 = vadd.s32 120, %v2513_v2  ;;  %v2927_v13 = vadd.s32 %v388_v16, %v2886_v8 }
 0x1db   : > { %vm1212_vm13 = vcmp.eq.s32.totalorder %v1184_v36, 1 }
 0x1dc   : > { %v2863_v18 = vsel %vm1212_vm13, %v1126_v52, -1.0 }
 0x1dd   : > { %v1240_v44 = vmax.f32 %v1236_v10, %v2863_v18 }
 0x1de   : > { %v1190_v61 = vpop.permute.xlu1 %1189 }
 0x1df   : > { %vm1214_vm14 = vcmp.eq.s32.totalorder %v1190_v61, 1 }
 0x1e0   : > { %v2867_v15 = vsel %vm1214_vm14, %v1130_v22, -1.0 }
 0x1e1   : > { %v1242_v53 = vmax.f32 %v1238_v11, %v2867_v15 }
 0x1e2   : > { %v1196_v38 = vpop.permute.xlu1 %1195 }
 0x1e3   : > { %vm1216_vm15 = vcmp.eq.s32.totalorder %v1196_v38, 1 }
 0x1e4   : > { %v2871_v37 = vsel %vm1216_vm15, %v1134_v51, -1.0 }
 0x1e5   : > { %v1244_v60 = vmax.f32 %v1240_v44, %v2871_v37 }
 0x1e6   : > { %v1202_v35 = vpop.permute.xlu1 %1201 }
 0x1e7   : > { %v1247_v17 = vmax.f32 %v1243_v46, %v1244_v60  ;;  %vm1218_vm0 = vcmp.eq.s32.totalorder %v1202_v35, 1  ;;  %v2913_v46 = vadd.s32 96, %v2513_v2 }
 0x1e8   : > { %v1234_v40 = vsel %vm1218_vm0, %v1138_v47, -1.0  ;;  %vm390_vm0 = vcmp.lt.s32.totalorder %v2927_v13, 300 }
 0x1e9   : > { %v1246_v41 = vmax.f32 %v1242_v53, %v1234_v40 }
 0x1eb   : > { %v1248_v55 = vmax.f32 %v1245_v4, %v1246_v41 }
 0x1ed   : > { %v1249_v12 = vmax.f32 %v1247_v17, %v1248_v55 }
 0x1ef   : > { %v1250_v23 = vrot.slane %v1249_v12, 4 }
 0x1f1   : > { %v1251_v59 = vmax.f32 %v1249_v12, %v1250_v23 }
 0x1f3   : > { %v1252_v31 = vrot.slane %v1251_v59, 2 }
 0x1f5   : > { %v1253_v50 = vmax.f32 %v1251_v59, %v1252_v31 }
 0x1f7   : > { %v1254_v27 = vrot.slane %v1253_v50, 1 }
 0x1f9   : > { %v2915_v10 = vmax.f32 %v1253_v50, %v1254_v27  ;;  %v2110_v27 = vmov 1.0  }
 0x1fb   : > { %vm1273_vm1 = vcmp.eq.f32.partialorder %v2809_v24, %v2915_v10  ;;  %vm1274_vm2 = vcmp.eq.f32.partialorder %v2840_v30, %v2915_v10  ;;  %vm1275_vm3 = vcmp.eq.f32.partialorder %v2824_v28, %v2915_v10  ;;  %vm1276_vm4 = vcmp.eq.f32.partialorder %v2853_v20, %v2915_v10 }
 0x1fc   : > { %vm1277_vm5 = vcmp.eq.f32.partialorder %v2806_v5, %v2915_v10  ;;  %vm1278_vm6 = vcmp.eq.f32.partialorder %v2844_v62, %v2915_v10  ;;  %vm1279_vm7 = vcmp.eq.f32.partialorder %v2820_v14, %v2915_v10  ;;  %vm1280_vm8 = vcmp.eq.f32.partialorder %v2857_v54, %v2915_v10 }
 0x1fd   : > { %vm1281_vm9 = vcmp.eq.f32.partialorder %v2822_v57, %v2915_v10  ;;  %vm1282_vm10 = vcmp.eq.f32.partialorder %v2863_v18, %v2915_v10  ;;  %vm1283_vm11 = vcmp.eq.f32.partialorder %v2834_v26, %v2915_v10  ;;  %vm1284_vm12 = vcmp.eq.f32.partialorder %v2867_v15, %v2915_v10 }
 0x1fe   : > { %vm1285_vm13 = vcmp.eq.f32.partialorder %v2842_v0, %v2915_v10  ;;  %vm1286_vm14 = vcmp.eq.f32.partialorder %v2871_v37, %v2915_v10  ;;  %vm1287_vm15 = vcmp.eq.f32.partialorder %v2855_v29, %v2915_v10  ;;  %v1289_v4 = vsel %vm1273_vm1, %v2513_v2, 128 }
 0x1ff   : > { %v1290_v11 = vsel %vm1274_vm2, %v2877_v34, 128  ;;  %v1291_v52 = vsel %vm1275_vm3, %v2880_v33, 128  ;;  %v1292_v36 = vsel %vm1276_vm4, %v2883_v63, 128  ;;  %v1293_v24 = vsel %vm1277_vm5, %v2889_v25, 128 }
 0x200   : > { %v1294_v30 = vsel %vm1278_vm6, %v2892_v43, 128  ;;  %v1295_v28 = vsel %vm1279_vm7, %v2895_v42, 128  ;;  %v1296_v20 = vsel %vm1280_vm8, %v2898_v3, 128  ;;  %v1297_v5 = vsel %vm1281_vm9, %v2901_v21, 128 }
 0x201   : > { %v1298_v62 = vsel %vm1282_vm10, %v2904_v45, 128  ;;  %v1299_v14 = vsel %vm1283_vm11, %v2907_v49, 128  ;;  %v1300_v54 = vsel %vm1284_vm12, %v2910_v58, 128  ;;  %v1301_v57 = vsel %vm1285_vm13, %v2913_v46, 128 }
 0x202   : > { %v1302_v9 = vsel %vm1286_vm14, %v2918_v56, 128  ;;  %v1303_v26 = vsel %vm1287_vm15, %v2921_v6, 128  ;;  %vm3199_vm1 = vcmp.eq.f32.partialorder %v1234_v40, %v2915_v10  ;;  %vm1305_vm2 = vcmp.lt.s32.totalorder %v1289_v4, %v1293_v24 }
 0x203   : > { %v1304_v18 = vsel %vm3199_vm1, %v2924_v32, 128  ;;  %vm1307_vm3 = vcmp.lt.s32.totalorder %v1290_v11, %v1294_v30  ;;  %vm1309_vm4 = vcmp.lt.s32.totalorder %v1291_v52, %v1295_v28  ;;  %vm1311_vm5 = vcmp.lt.s32.totalorder %v1292_v36, %v1296_v20 }
 0x204   : > { %v1306_v0 = vsel %vm1305_vm2, %v1289_v4, %v1293_v24  ;;  %v1308_v44 = vsel %vm1307_vm3, %v1290_v11, %v1294_v30  ;;  %v1310_v22 = vsel %vm1309_vm4, %v1291_v52, %v1295_v28  ;;  %v1312_v61 = vsel %vm1311_vm5, %v1292_v36, %v1296_v20 }
 0x205   : > { %vm1313_vm6 = vcmp.lt.s32.totalorder %v1306_v0, %v1297_v5  ;;  %vm1315_vm7 = vcmp.lt.s32.totalorder %v1308_v44, %v1298_v62  ;;  %vm1317_vm8 = vcmp.lt.s32.totalorder %v1310_v22, %v1299_v14  ;;  %vm1319_vm9 = vcmp.lt.s32.totalorder %v1312_v61, %v1300_v54 }
 0x206   : > { %v1314_v19 = vsel %vm1313_vm6, %v1306_v0, %v1297_v5  ;;  %v1316_v15 = vsel %vm1315_vm7, %v1308_v44, %v1298_v62  ;;  %v1318_v29 = vsel %vm1317_vm8, %v1310_v22, %v1299_v14  ;;  %v1320_v53 = vsel %vm1319_vm9, %v1312_v61, %v1300_v54  ;;  %v3209_v14 = vld [vmem:[#allocation11_spill] sm:$0xff] }
 0x207   : > { %vm1321_vm10 = vcmp.lt.s32.totalorder %v1314_v19, %v1301_v57  ;;  %vm1323_vm11 = vcmp.lt.s32.totalorder %v1316_v15, %v1302_v9  ;;  %vm1325_vm12 = vcmp.lt.s32.totalorder %v1318_v29, %v1303_v26  ;;  %vm1327_vm13 = vcmp.lt.s32.totalorder %v1320_v53, %v1304_v18 }
 0x208   : > { %v1322_v51 = vsel %vm1321_vm10, %v1314_v19, %v1301_v57  ;;  %v1324_v38 = vsel %vm1323_vm11, %v1316_v15, %v1302_v9  ;;  %v1326_v1 = vsel %vm1325_vm12, %v1318_v29, %v1303_v26  ;;  %v1328_v37 = vsel %vm1327_vm13, %v1320_v53, %v1304_v18 }
 0x209   : > { %vm1329_vm14 = vcmp.lt.s32.totalorder %v1322_v51, %v1324_v38  ;;  %vm1331_vm15 = vcmp.lt.s32.totalorder %v1326_v1, %v1328_v37  ;;  %vm1462_vm1 = vcmp.ge.f32.partialorder %v2915_v10, 0.5  ;;  %vm1464_vm2 = vcmp.lt.f32.partialorder %v2915_v10, 0.4  ;;  %v1999_v10 = vpop.eup %1998 }
 0x20a   : > { %v1330_v60 = vsel %vm1329_vm14, %v1322_v51, %v1324_v38  ;;  %v1332_v47 = vsel %vm1331_vm15, %v1326_v1, %v1328_v37  ;;  %vm3028_vm3 = vmand %vm1462_vm1, %vm390_vm0  ;;  %vm1501_vm6 = vcmask 1040384   ;;  %v2111_v53 = vmov 0.75  }
 0x20b   : > { %vm1333_vm4 = vcmp.lt.s32.totalorder %v1330_v60, %v1332_v47  ;;  %vm3034_vm5 = vmand %vm1464_vm2, %vm390_vm0 }
 0x20c   : > { %v1334_v40 = vsel %vm1333_vm4, %v1330_v60, %v1332_v47  ;;  %vm1466_vm7 = vmor %vm3028_vm3, %vm3034_vm5  ;;  %vm1588_vm5 = vcmp.eq.s32.totalorder %v2886_v8, 1 }
 0x20d   : > { %v1335_v41 = vrot.slane %v1334_v40, 4  ;;  %v1793_v55 = vsel %vm1466_vm7, 1.0, %v3197_v7 }
 0x20e   : > { %v1502_v12 = vsel %vm1501_vm6, %v1793_v55, 0.0 }
 0x20f   : > { %vm1336_vm0 = vcmp.lt.s32.totalorder %v1334_v40, %v1335_v41  ;;  %1503 = vadd.xlane.f32.xlu1 %v1502_v12 }
 0x210   : > { %v1337_v23 = vsel %vm1336_vm0, %v1334_v40, %v1335_v41 }
 0x211   : > { %v1338_v59 = vrot.slane %v1337_v23, 2 }
 0x213   : > { %vm1339_vm8 = vcmp.lt.s32.totalorder %v1337_v23, %v1338_v59 }
 0x214   : > { %v1340_v31 = vsel %vm1339_vm8, %v1337_v23, %v1338_v59 }
 0x215   : > { %v1341_v50 = vrot.slane %v1340_v31, 1 }
 0x217   : > { %vm1342_vm9 = vcmp.lt.s32.totalorder %v1340_v31, %v1341_v50 }
 0x218   : > { %v1343_v48 = vsel %vm1342_vm9, %v1340_v31, %v1341_v50 }
 0x219   : > { %vm1359_vm10 = vcmp.eq.s32.totalorder %v2924_v32, %v1343_v48  ;;  %vm1358_vm11 = vcmp.eq.s32.totalorder %v2921_v6, %v1343_v48  ;;  %vm1357_vm12 = vcmp.eq.s32.totalorder %v2918_v56, %v1343_v48  ;;  %vm1356_vm13 = vcmp.eq.s32.totalorder %v2913_v46, %v1343_v48 }
 0x21a   : > { %1819 = vmatpush3.msk.msra.mxu0 %vm1359_vm10, %v2110_v27  ;;  %vm1355_vm14 = vcmp.eq.s32.totalorder %v2910_v58, %v1343_v48  ;;  %vm1354_vm15 = vcmp.eq.s32.totalorder %v2907_v49, %v1343_v48  ;;  %vm1353_vm1 = vcmp.eq.s32.totalorder %v2904_v45, %v1343_v48  ;;  %vm1352_vm2 = vcmp.eq.s32.totalorder %v2901_v21, %v1343_v48 }
 0x21b   : > { %1820 = vmatprep.subr.mxu0 %v3197_v7  ;;  %vm1351_vm4 = vcmp.eq.s32.totalorder %v2898_v3, %v1343_v48  ;;  %vm1350_vm0 = vcmp.eq.s32.totalorder %v2895_v42, %v1343_v48  ;;  %vm1349_vm8 = vcmp.eq.s32.totalorder %v2892_v43, %v1343_v48  ;;  %vm1348_vm9 = vcmp.eq.s32.totalorder %v2889_v25, %v1343_v48  ;;  %v3204_v25 = vld [vmem:[#allocation9_spill] sm:$0xff]  ;;  %v3205_v43 = vld [vmem:[#allocation12_spill] sm:$0xff] }
 0x21c   : > { %1821 = vmatpush3.msk.msra.mxu0 %vm1358_vm11, %v2110_v27  ;;  %vm1347_vm10 = vcmp.eq.s32.totalorder %v2883_v63, %v1343_v48  ;;  %vm1346_vm11 = vcmp.eq.s32.totalorder %v2880_v33, %v1343_v48  ;;  %v1528_v63 = vrot.slane %v2652_v39, 2  ;;  %v1476_v16 = vmax.f32 %v3205_v43, 1e-05 }
 0x21d   : > { %1822 = vmatprep.subr.mxu0 %v3197_v7  ;;  %v1470_v42 = vsub.s32 4, %v2513_v2 }
 0x21e   : > { %1823 = vmatpush3.msk.msra.mxu0 %vm1357_vm12, %v2110_v27  ;;  %vm1345_vm12 = vcmp.eq.s32.totalorder %v2877_v34, %v1343_v48  ;;  %2000 = vrcp.f32 %v1528_v63  ;;  %v1512_v34 = vmul.f32 0.5, %v2652_v39  ;;  %v1477_v45 = vmin.f32 %v1476_v16, 0.99999  ;;  %v3208_v39 = vld [vmem:[#allocation10_spill] sm:$0xff] }
 0x21f   : > { %1824 = vmatprep.subr.mxu0 %v3197_v7  ;;  %v1796_v16 = vsel %vm3028_vm3, 1.0, %v3197_v7 }
 0x220   : > { %1825 = vmatpush3.msk.msra.mxu0 %vm1356_vm13, %v2110_v27  ;;  %vm1344_vm13 = vcmp.eq.s32.totalorder %v2513_v2, %v1343_v48  ;;  %v1514_v6 = vrot.slane %v1512_v34, 2  ;;  %v1478_v13 = vsub.f32 1.0, %v1477_v45 }
 0x221   : > { %1826 = vmatprep.subr.mxu0 %v3197_v7 }
 0x222   : > { %1827 = vmatpush3.msk.msra.mxu0 %vm1355_vm14, %v2110_v27  ;;  %v1516_v36 = vadd.f32 %v1514_v6, %v3208_v39 }
 0x223   : > { %1828 = vmatprep.subr.mxu0 %v3197_v7 }
 0x224   : > { %1829 = vmatpush3.msk.msra.mxu0 %vm1354_vm15, %v2110_v27 }
 0x225   : > { %1830 = vmatprep.subr.mxu0 %v3197_v7 }
 0x226   : > { %1831 = vmatpush3.msk.msra.mxu0 %vm1353_vm1, %v2110_v27 }
 0x227   : > { %1832 = vmatprep.subr.mxu0 %v3197_v7 }
 0x228   : > { %1833 = vmatpush3.msk.msra.mxu0 %vm1352_vm2, %v2110_v27 }
 0x229   : > { %1834 = vmatprep.subr.mxu0 %v3197_v7 }
 0x22a   : > { %1835 = vmatpush3.msk.msra.mxu0 %vm1351_vm4, %v2110_v27 }
 0x22b   : > { %1836 = vmatprep.subr.mxu0 %v3197_v7  ;;  %v2001_v20 = vpop.eup %2000 }
 0x22c   : > { %1837 = vmatpush3.msk.msra.mxu0 %vm1350_vm0, %v2110_v27 }
 0x22d   : > { %1838 = vmatprep.subr.mxu0 %v3197_v7 }
 0x22e   : > { %1839 = vmatpush3.msk.msra.mxu0 %vm1349_vm8, %v2110_v27 }
 0x22f   : > { %1840 = vmatprep.subr.mxu0 %v3197_v7 }
 0x230   : > { %1841 = vmatpush3.msk.msra.mxu0 %vm1348_vm9, %v2110_v27 }
 0x231   : > { %1842 = vmatprep.subr.mxu0 %v3197_v7 }
 0x232   : > { %1843 = vmatpush3.msk.msra.mxu0 %vm1347_vm10, %v2110_v27 }
 0x233   : > { %1844 = vmatprep.subr.mxu0 %v3197_v7 }
 0x234   : > { %1845 = vmatpush3.msk.msra.mxu0 %vm1346_vm11, %v2110_v27 }
 0x235   : > { %1846 = vmatprep.subr.mxu0 %v3197_v7 }
 0x236   : > { %1847 = vmatpush3.msk.msra.mxu0 %vm1345_vm12, %v2110_v27 }
 0x237   : > { %1848 = vmatprep.subr.mxu0 %v3197_v7 }
 0x238   : > { %1849 = vmatpush3.msk.msra.mxu0 %vm1344_vm13, %v2110_v27 }
 0x239   : > { %1851 = vmatmul.mubr.f32.vlgmr.msra.gmra.mxu0 %v3204_v25 }
 0x2f9   : > { %v1458_v33 = vpop.f32.mrf.mxu0 }
 0x2fa   : > { %v1854_v3 = vtrunc.f32 %v1458_v33  ;;  %v1518_v21 = vrot.slane %v1458_v33, 6 }
 0x2fb   : > { %v1852_v49 = vpop.f32.mrf.mxu0 }
 0x2fc   : > { %v1855_v58 = vcvt.f32.s32 %v1854_v3  ;;  %v1520_v46 = vsub.f32 %v1458_v33, %v1518_v21 }
 0x2fe   : > { %v1471_v56 = vrot.slane %v1855_v58, %v1470_v42  ;;  %v1521_v32 = vmax.f32 %v1520_v46, 1.0  ;;  %v1504_v42 = vpop.xlane.xlu1 %1503 }
 0x2ff   : > { %v1505_v3 = vrot.slane %v1504_v42, 4 }
 0x300   : > { %v1522_v4 = vmul.f32 0.5, %v1521_v32  ;;  %v1545_v11 = vmul.f32 %v1999_v10, %v1521_v32  ;;  %vm1472_vm14 = vcmp.eq.s32.totalorder %v2513_v2, %v1471_v56 }
 0x301   : > { %vm3089_vm15 = vmand %vm3028_vm3, %vm1472_vm14  ;;  %v1506_v34 = vadd.f32 %v1505_v3, %v1504_v42 }
 0x302   : > { %v1524_v24 = vrot.slane %v1522_v4, 2  ;;  %2002 = vlog2.f32 %v1545_v11  ;;  %v1479_v30 = vsel %vm3089_vm15, %v1477_v45, %v1478_v13  ;;  %v1487_v51 = vsel %vm3089_vm15, 0.25, %v2111_v53 }
 0x303   : > { %2004 = vlog2.f32 %v1479_v30  ;;  %v1486_v57 = vsub.f32 1.0, %v1479_v30  ;;  %v1507_v21 = vrot.slane %v1506_v34, 2 }
 0x304   : > { %v1526_v28 = vadd.f32 %v1524_v24, %v1458_v33  ;;  %v1575_v33 = vsel %vm1501_vm6, %v1796_v16, 0.0 }
 0x305   : > { %v1488_v44 = vmul.f32 %v1486_v57, %v1486_v57  ;;  %v1508_v46 = vadd.f32 %v1507_v21, %v1506_v34 }
 0x306   : > { %v1527_v5 = vsub.f32 %v1526_v28, %v1516_v36 }
 0x307   : > { %v1489_v1 = vmul.f32 %v1488_v44, %v1487_v51  ;;  %v1509_v6 = vrot.slane %v1508_v46, 1 }
 0x308   : > { %v1531_v62 = vmul.f32 %v2001_v20, %v1527_v5 }
 0x309   : > { %v1510_v4 = vadd.f32 %v1509_v6, %v1508_v46 }
 0x30a   : > { %v1532_v2 = vsub.f32 %v1531_v62, %v3209_v14 }
 0x30c   : > { %v1533_v54 = vand.u32 2147483647, %v1532_v2 }
 0x30e   : > { %v1535_v9 = vmul.f32 3.0, %v1533_v54  ;;  %v1794_v37 = vadd.f32 -0.055555556, %v1533_v54  ;;  %vm1534_vm1 = vcmp.le.f32.partialorder %v1533_v54, 0.11111111 }
 0x30f   : > { %v2003_v26 = vpop.eup %2002 }
 0x310   : > { %v2005_v18 = vpop.eup %2004  ;;  %v1547_v0 = vmul.f32 0.6931472, %v2003_v26  ;;  %v1536_v22 = vmul.f32 0.5, %v1535_v9 }
 0x311   : > { %v1481_v61 = vmul.f32 0.6931472, %v2005_v18 }
 0x312   : > { %v1548_v19 = vsub.f32 %v1547_v0, %v3209_v14  ;;  %v1537_v15 = vmul.f32 %v1536_v22, %v1535_v9 }
 0x313   : > { %v1482_v29 = vsub.f32 0.0, %v1481_v61 }
 0x314   : > { %v1549_v38 = vand.u32 2147483647, %v1548_v19  ;;  %v1539_v40 = vsel %vm1534_vm1, %v1537_v15, %v1794_v37  ;;  %v1600_v15 = vld [vmem:[%s2274_s24] sm:$0x1] }
 0x315   : > { %v1485_v60 = vsel %vm1466_vm7, %v1482_v29, 0.0  ;;  %v1541_v12 = vrot.slane %v1539_v40, 1  ;;  %vm1596_vm7 = vcmp.eq.s32.totalorder %v2886_v8, 3 }
 0x316   : > { %v1490_v47 = vmul.f32 %v1489_v1, %v1485_v60  ;;  %v1551_v41 = vmul.f32 3.0, %v1549_v38  ;;  %v1795_v59 = vadd.f32 -0.055555556, %v1549_v38  ;;  %vm1550_vm2 = vcmp.le.f32.partialorder %v1549_v38, 0.11111111 }
 0x317   : > { %v1543_v50 = vadd.f32 %v1541_v12, %v1539_v40 }
 0x318   : > { %1491 = vadd.xlane.f32.xlu0 %v1490_v47  ;;  %v1552_v55 = vmul.f32 0.5, %v1551_v41 }
 0x31a   : > { %v1553_v23 = vmul.f32 %v1552_v55, %v1551_v41 }
 0x31c   : > { %v1555_v31 = vsel %vm1550_vm2, %v1553_v23, %v1795_v59 }
 0x31d   : > { %v1557_v48 = vrot.slane %v1555_v31, 2  ;;  %v1560_v25 = vrot.slane %v1555_v31, 3 }
 0x31f   : > { %v1559_v27 = vadd.f32 %v1557_v48, %v1543_v50 }
 0x321   : > { %v1562_v63 = vadd.f32 %v1560_v25, %v1559_v27 }
 0x323   : > { %v1563_v17 = vsel %vm3028_vm3, %v1562_v63, 0.0  ;;  %vm1585_vm3 = vcmp.eq.s32.totalorder %v2886_v8, 0 }
 0x324   : > { %v1564_v43 = vsel %vm1501_vm6, %v1563_v17, 0.0  ;;  %vm1592_vm6 = vcmp.eq.s32.totalorder %v2886_v8, 2 }
 0x325   : > { %1565 = vadd.xlane.f32.xlu0 %v1564_v43 }
 0x329   : > { %1576 = vadd.xlane.f32.xlu0 %v1575_v33 }
 0x3a1   : > { %v1492_v45 = vpop.xlane.xlu0 %1491 }
 0x3a2   : > { %v1493_v49 = vrot.slane %v1492_v45, 4 }
 0x3a4   : > { %v1494_v58 = vadd.f32 %v1493_v49, %v1492_v45 }
 0x3a6   : > { %v1495_v10 = vrot.slane %v1494_v58, 2 }
 0x3a8   : > { %v1496_v56 = vadd.f32 %v1495_v10, %v1494_v58 }
 0x3aa   : > { %v1497_v32 = vrot.slane %v1496_v56, 1 }
 0x3ac   : > { %v1498_v13 = vadd.f32 %v1497_v32, %v1496_v56 }
 0x3ae   : > { %1856 = vpush %v1498_v13  ;;  %v1566_v35 = vpop.xlane.xlu0 %1565 }
 0x3af   : > { %1858 = vpush %v1510_v4  ;;  %v1567_v7 = vrot.slane %v1566_v35, 4 }
 0x3b1   : > { %v1568_v11 = vadd.f32 %v1567_v7, %v1566_v35 }
 0x3b2   : > { %v1577_v52 = vpop.xlane.xlu0 %1576 }
 0x3b3   : > { %v1569_v39 = vrot.slane %v1568_v11, 2  ;;  %v1578_v36 = vrot.slane %v1577_v52, 4 }
 0x3b5   : > { %v1579_v24 = vadd.f32 %v1578_v36, %v1577_v52  ;;  %v1570_v30 = vadd.f32 %v1569_v39, %v1568_v11 }
 0x3b7   : > { %v1580_v28 = vrot.slane %v1579_v24, 2  ;;  %v1571_v20 = vrot.slane %v1570_v30, 1 }
 0x3b9   : > { %v1581_v5 = vadd.f32 %v1580_v28, %v1579_v24  ;;  %v1572_v62 = vadd.f32 %v1571_v20, %v1570_v30 }
 0x3bb   : > { %1860 = vpush %v1572_v62  ;;  %v1582_v14 = vrot.slane %v1581_v5, 1 }
 0x3bd   : > { %v1583_v2 = vadd.f32 %v1582_v14, %v1581_v5 }
 0x3bf   : > { %1862 = vpush %v1583_v2 }
 0x3df   : > { %s1857_s21 = spop %1856 }
 0x3e0   : > { %s1859_s26 = spop %1858  ;;  %v1586_v54 = vstv %s1857_s21 }
 0x3e1   : > { %v1589_v57 = vstv %s1859_s26  ;;  %v1587_v9 = vsel %vm1585_vm3, %v1586_v54, 0.0 }
 0x3e2   : > { %v1590_v26 = vsel %vm1588_vm5, %v1589_v57, 0.0 }
 0x3e3   : > { %v1591_v44 = vadd.f32 %v1590_v26, %v1587_v9 }
 0x3ec   : > { %s1861_s27 = spop %1860 }
 0x3ed   : > { %v1593_v18 = vstv %s1861_s27 }
 0x3ee   : > { %v1594_v0 = vsel %vm1592_vm6, %v1593_v18, 0.0 }
 0x3ef   : > { %v1595_v22 = vadd.f32 %v1594_v0, %v1591_v44 }
 0x3f0   : > { %s1863_s7 = spop %1862 }
 0x3f1   : > { %v1597_v61 = vstv %s1863_s7 }
 0x3f2   : > { %v1598_v19 = vsel %vm1596_vm7, %v1597_v61, 0.0 }
 0x3f3   : > { %v1599_v29 = vadd.f32 %v1598_v19, %v1595_v22 }
 0x3f5   : > { %v1601_v53 = vadd.f32 %v1600_v15, %v1599_v29 }
 0x3f7   : > { %1602 = vst [vmem:[%s2274_s24] sm:$0x1] %v1601_v53 }
 0x3f8   : > { %2019 = shalt.err (!%p2016_p8)
}
 0x3f9   : > { %s2020_s29 = scalar_lea.hbm %s1614_s13, 16  ;;  %s2024_s21 = scalar_lea.hbm %s3170_s5, 32 }
 0x3fa   : > { %p2021_p10 = scmp.ne.s32.totalorder %s1614_s13, %s2020_s29  ;;  %p2025_p13 = scmp.lt.s32.totalorder %s1614_s13, %s3170_s5 }
 0x3fb   : > { %p2026_p0 = scmp.lt.s32.totalorder %s2024_s21, %s2020_s29 }
 0x3fc   : > { %p2022_p11 = pnand %p2021_p10, %p2192_p3 }
 0x3fd   : > { %p2027_p1 = por %p2026_p0, %p2025_p13 }
 0x3fe   : > { %p2023_p12 = pneg %p2022_p11 }
 0x400   : > { %p2028_p2 = pnand %p2027_p1, %p2023_p12 }
 0x402   : > { %2031 = shalt.err (!%p2028_p2)
}
 0x403   : > { %1864 = dma.vmem_to_hbm [thread:$0]  (%p2192_p3), %s1617_s14, 16, %s1614_s13, %s1604_s16  }
 0x404 PF: > { %p1870_p4 = scmp.ge.s32.totalorder %s2098_s25, 2  ;;  %s1628_s7 = sand.u32 1, %s2070_s18  }
 0x405   : > { %s1629_s8 = scalar_lea.sflag [#allocation3], %s1628_s7 }
 0x406   : > { %p1867_p5 = pnand %p1870_p4, %p2202_p9 }
 0x408   : > { %p1868_p6 = pneg %p1867_p5 }
 0x40a   : > { %2065 = dma.done.wait (%p1868_p6), %s1629_s8, 16  }
 0x40b   : > { %2067 = vsyncadd (%p1868_p6), %s1629_s8, 4294967280  ;;  %s18_s25 = sadd.s32 1, %s2098_s25   ;;  %s3211_s21 = sld [smem:[#allocation5_spill]] }
 0x40c   : > { %p15_p7 = scmp.ge.s32.totalorder %s18_s25, 8   ;;  %s3212_s22 = sld [smem:[#allocation6_spill]] }
 0x40d   : > { %s3213_s23 = sld [smem:[#allocation7_spill]]  ;;  %s3215_s18 = smov %s2074_s19 }
 0x40e   : > { %s3214_s24 = sld [smem:[#allocation8_spill]]  ;;  %s3216_s19 = smov %s2078_s20 }
 0x40f   : > { %s3217_s20 = smov %s2210_s9  ;;  %17 = sbr.rel (!%p15_p7) target bundleno = 5 (0x5), region = 91 }
 0x414   :  { %1633 = vsyncpa [#allocation3], 1 }
 0x415   :  { %1635 = vsyncpa [#allocation3 + $0x1], 1 }

</bundles_post_ra>
